<compile_context>
chip_gen: v6e
topology: v6e:2x2x1
jax: 0.10.0
libtpu: 0.0.40
codegen_flags: <defaults>
</compile_context>

<pallas_src>
import functools
import math

import jax
import jax.numpy as jnp
from jax.experimental import pallas as pl
from jax.experimental.pallas import tpu as pltpu

EPS = 1e-5                      # nn.BatchNorm2d default eps
LANE = 128                      # TPU lane width
VMEM_BUDGET = 20 * 1024 * 1024  # per-tile working-set target (fits all gens)
VMEM_LIMIT = 48 * 1024 * 1024   # scoped VMEM limit (safe on v5e/v6e/v7x)


def _round_up(x, m):
    return (x + m - 1) // m * m


def _pick_tile_h(H, W, Cin, Cout_p):
    """Row-tile height TH: TH*W multiple of 128 (lane-dense stores), VMEM-budgeted."""
    t_unit = 128 // math.gcd(W, 128)
    if t_unit >= H:
        return H                      # single tile per image; block == full dim
    K = 9 * Cin
    Wp = W + 2

    def est(th):
        rows = th * W
        return (2 * th * Wp * Cin * 2          # double-buffered input rows (bf16)
                + (th + 2) * Wp * Cin * 2      # halo-joined window temp (bf16)
                + rows * K * 2                 # in-VMEM patches (bf16)
                + 2 * rows * Cout_p * 4        # f32 conv tile + transposed copy
                + 2 * rows * Cout_p * 4        # double-buffered output tile
                + 2 * K * Cout_p * 2)          # weights

    th = t_unit
    while th * 2 <= H and th * W < 4096 and est(th * 2) <= VMEM_BUDGET:
        th *= 2
    return th


def _conv_tile(main_ref, h1_ref, h2_ref, w_ref, TH, W, Cin):
    """3x3 'SAME' conv of one row tile -> (TH*W, Cout_p) f32 via one MXU matmul.

    main_ref: (1, TH, W+2, Cin) rows of the zero-padded NHWC input (bf16)
    h1/h2  : (1, 1, W+2, Cin) the two halo rows below the tile
    w_ref  : (9*Cin, Cout_p) bf16 weights, (kh, kw, cin)-major rows
    """
    win = jnp.concatenate([main_ref[0], h1_ref[0], h2_ref[0]], axis=0)  # (TH+2, W+2, Cin)
    patches = jnp.concatenate(
        [win[dy:dy + TH, dx:dx + W, :].reshape(TH * W, Cin)
         for dy in range(3) for dx in range(3)],
        axis=1)                                                          # (TH*W, 9*Cin) bf16
    return jnp.dot(patches, w_ref[...], preferred_element_type=jnp.float32)


# ---------------- pass 1: conv (kept on-chip) + per-tile channel moments -----
def _stats_kernel(main_ref, h1_ref, h2_ref, w_ref, stats_ref, *, TH, W, Cin):
    conv = _conv_tile(main_ref, h1_ref, h2_ref, w_ref, TH, W, Cin)       # f32
    stats_ref[0, 0, 0:1, :] = jnp.sum(conv, axis=0, keepdims=True)
    stats_ref[0, 0, 1:2, :] = jnp.sum(conv * conv, axis=0, keepdims=True)


# ---------------- pass 2: recompute conv, folded BN + ReLU, NCHW store -------
def _bn_relu_kernel(main_ref, h1_ref, h2_ref, w_ref, scale_ref, shift_ref,
                    out_ref, *, TH, W, Cin, Cout):
    conv = _conv_tile(main_ref, h1_ref, h2_ref, w_ref, TH, W, Cin)       # (TH*W, Cout_p)
    y = jnp.maximum(conv * scale_ref[...] + shift_ref[...], 0.0)
    # Write the NCHW layout directly: (Cout, TH*W) with a lane-dense last dim.
    out_ref[0] = jnp.transpose(y)[:Cout, :].astype(out_ref.dtype)


def cbn_forward(x_nchw, w_oihw, bias, gamma, beta):
    """Conv2d(3x3, pad=1) -> BatchNorm2d (training batch stats) -> ReLU."""
    del bias   # cancelled exactly by the BN batch-mean subtraction
    # TODO(synk): if this layer is ever used with BN running stats (eval mode),
    # the conv bias must be re-added and mean/var taken from the buffers.
    N, Cin, H, W = x_nchw.shape
    Cout = w_oihw.shape[0]
    K = 9 * Cin
    Cout_p = _round_up(Cout, LANE)

    TH = _pick_tile_h(H, W, Cin, Cout_p)
    nH = -(-H // TH)
    H_t = nH * TH
    Wp = W + 2
    Hp = H_t + 2

    # Single layout pass: NCHW f32 -> zero-padded NHWC bf16.  The 3x3 patch
    # construction itself happens inside the kernels (in VMEM).
    # TODO(synk): fold this layout pass into the kernels (read NCHW blocks and
    # transpose on the XLU) if it ever shows up in profiles.
    x = jnp.transpose(x_nchw, (0, 2, 3, 1)).astype(jnp.bfloat16)          # (N, H, W, Cin)
    xp = jnp.pad(x, ((0, 0), (1, 1 + (H_t - H)), (1, 1), (0, 0)))          # (N, Hp, Wp, Cin)

    # OIHW -> (kh, kw, Cin, Cout) -> (9*Cin, Cout), lane-padded, bf16.
    wmat = jnp.transpose(w_oihw, (2, 3, 1, 0)).reshape(K, Cout)
    wmat = jnp.pad(wmat, ((0, 0), (0, Cout_p - Cout))).astype(jnp.bfloat16)

    grid = (N, nH)
    x_main_spec = pl.BlockSpec((1, TH, Wp, Cin), lambda n, i: (n, i, 0, 0))
    x_halo1_spec = pl.BlockSpec((1, 1, Wp, Cin), lambda n, i: (n, (i + 1) * TH, 0, 0))
    x_halo2_spec = pl.BlockSpec((1, 1, Wp, Cin), lambda n, i: (n, (i + 1) * TH + 1, 0, 0))
    w_spec = pl.BlockSpec((K, Cout_p), lambda n, i: (0, 0))
    cparams = pltpu.CompilerParams(
        dimension_semantics=("parallel", "parallel"),
        vmem_limit_bytes=VMEM_LIMIT)

    # ---- pass 1: per-tile channel sum / sum-of-squares of the conv ----
    stats = pl.pallas_call(
        functools.partial(_stats_kernel, TH=TH, W=W, Cin=Cin),
        out_shape=jax.ShapeDtypeStruct((N, nH, 2, Cout_p), jnp.float32),
        grid=grid,
        in_specs=[x_main_spec, x_halo1_spec, x_halo2_spec, w_spec],
        out_specs=pl.BlockSpec((1, 1, 2, Cout_p), lambda n, i: (n, i, 0, 0)),
        compiler_params=cparams,
    )(xp, xp, xp, wmat)

    # ---- tiny epilogue: combine moments, fold BN into per-channel scale/shift
    # Padded rows contribute exact zeros to the sums (zero inputs, no bias),
    # so dividing by the true element count R is exact.
    # NOTE: E[x^2]-mean^2 in f32 is adequate here (conv outputs roughly
    # zero-centered); switch to a centered/compensated combine if |mean|>>std.
    R = N * H * W
    s = jnp.sum(stats[:, :, 0, :], axis=(0, 1))
    ss = jnp.sum(stats[:, :, 1, :], axis=(0, 1))
    mean = s / R
    var = jnp.maximum(ss / R - mean * mean, 0.0)          # biased, BN training fwd
    gamma_p = jnp.pad(gamma.astype(jnp.float32), (0, Cout_p - Cout))
    beta_p = jnp.pad(beta.astype(jnp.float32), (0, Cout_p - Cout))
    scale = gamma_p * jax.lax.rsqrt(var + EPS)
    shift = beta_p - mean * scale
    scale = scale.reshape(1, Cout_p)
    shift = shift.reshape(1, Cout_p)

    # ---- pass 2: recompute conv, apply folded BN + ReLU, store NCHW ----
    out_flat = pl.pallas_call(
        functools.partial(_bn_relu_kernel, TH=TH, W=W, Cin=Cin, Cout=Cout),
        out_shape=jax.ShapeDtypeStruct((N, Cout, H_t * W), jnp.float32),
        grid=grid,
        in_specs=[x_main_spec, x_halo1_spec, x_halo2_spec, w_spec,
                  pl.BlockSpec((1, Cout_p), lambda n, i: (0, 0)),
                  pl.BlockSpec((1, Cout_p), lambda n, i: (0, 0))],
        out_specs=pl.BlockSpec((1, Cout, TH * W), lambda n, i: (n, 0, i)),
        compiler_params=cparams,
    )(xp, xp, xp, wmat, scale, shift)

    out = out_flat.reshape(N, Cout, H_t, W)
    if H_t != H:
        out = out[:, :, :H, :]
    return out


def cbn_reference(x_nchw, w_oihw, bias, gamma, beta):
    """Module-faithful forward (includes the conv bias, which BN cancels).

    Inputs are rounded to bf16 to match the kernel's MXU input precision;
    all accumulation / BN math stays in f32 in both paths.
    """
    x = jnp.transpose(x_nchw, (0, 2, 3, 1)).astype(jnp.bfloat16).astype(jnp.float32)
    w = jnp.transpose(w_oihw, (2, 3, 1, 0)).astype(jnp.bfloat16).astype(jnp.float32)
    conv = jax.lax.conv_general_dilated(
        x, w, window_strides=(1, 1), padding="SAME",
        dimension_numbers=("NHWC", "HWIO", "NHWC")) + bias
    mean = conv.mean(axis=(0, 1, 2))
    var = conv.var(axis=(0, 1, 2))          # biased, as in BN training forward
    y = (conv - mean) * jax.lax.rsqrt(var + EPS) * gamma + beta
    y = jnp.maximum(y, 0.0)
    return jnp.transpose(y, (0, 3, 1, 2))


if __name__ == "__main__":
    key = jax.random.PRNGKey(0)
    k_x, k_w, k_b, k_g, k_be = jax.random.split(key, 5)

    N, Cin, H, W = 2, 4, 16, 16
    Cout = 8

    x = jax.random.normal(k_x, (N, Cin, H, W), dtype=jnp.float32)
    w = jax.random.normal(k_w, (Cout, Cin, 3, 3), dtype=jnp.float32) * 0.1
    b = jax.random.normal(k_b, (Cout,), dtype=jnp.float32) * 0.1
    gamma = 1.0 + 0.1 * jax.random.normal(k_g, (Cout,), dtype=jnp.float32)
    beta = 0.1 * jax.random.normal(k_be, (Cout,), dtype=jnp.float32)

    out = jax.block_until_ready(cbn_forward(x, w, b, gamma, beta))
    ref = jax.block_until_ready(cbn_reference(x, w, b, gamma, beta))

    assert out.shape == (N, Cout, H, W)
    max_err = float(jnp.max(jnp.abs(out - ref)))
    assert jnp.allclose(out, ref, atol=1e-3, rtol=1e-3), max_err

    print("KERNEL_OK")
</pallas_src>

<mosaic_0001>
module attributes {stable_mosaic.version = 11 : i64} {
  func.func @_stats_kernel(%arg0: i32, %arg1: i32, %arg2: memref<1x16x18x4xbf16, #tpu.memory_space<vmem>>, %arg3: memref<1x1x18x4xbf16, #tpu.memory_space<vmem>>, %arg4: memref<1x1x18x4xbf16, #tpu.memory_space<vmem>>, %arg5: memref<36x128xbf16, #tpu.memory_space<vmem>>, %arg6: memref<1x1x2x128xf32, #tpu.memory_space<vmem>>) attributes {dimension_semantics = [#tpu.dimension_semantics<parallel>, #tpu.dimension_semantics<parallel>], iteration_bounds = array<i64: 2, 1>, scalar_prefetch = 0 : i64, scratch_operands = 0 : i64, tpu.core_type = #tpu.core_type<tc>, window_params = [{transform_indices = @transform_0, window_bounds = array<i64: 1, 16, 18, 4>}, {transform_indices = @transform_1, window_bounds = array<i64: 1, 1, 18, 4>}, {transform_indices = @transform_2, window_bounds = array<i64: 1, 1, 18, 4>}, {pipeline_mode = #tpu.pipeline_mode<synchronous>, transform_indices = @transform_3, window_bounds = array<i64: 36, 128>}, {transform_indices = @transform_4, window_bounds = array<i64: 1, 1, 2, 128>}]} {
    %c0 = arith.constant 0 : index
    %c0_0 = arith.constant 0 : index
    %c0_1 = arith.constant 0 : index
    %c0_2 = arith.constant 0 : index
    %0 = vector.load %arg2[%c0, %c0_0, %c0_1, %c0_2] : memref<1x16x18x4xbf16, #tpu.memory_space<vmem>>, vector<1x16x18x4xbf16>
    %1 = vector.shape_cast %0 : vector<1x16x18x4xbf16> to vector<16x18x4xbf16>
    %c0_3 = arith.constant 0 : index
    %c0_4 = arith.constant 0 : index
    %c0_5 = arith.constant 0 : index
    %c0_6 = arith.constant 0 : index
    %2 = vector.load %arg3[%c0_3, %c0_4, %c0_5, %c0_6] : memref<1x1x18x4xbf16, #tpu.memory_space<vmem>>, vector<1x1x18x4xbf16>
    %3 = vector.shape_cast %2 : vector<1x1x18x4xbf16> to vector<1x18x4xbf16>
    %c0_7 = arith.constant 0 : index
    %c0_8 = arith.constant 0 : index
    %c0_9 = arith.constant 0 : index
    %c0_10 = arith.constant 0 : index
    %4 = vector.load %arg4[%c0_7, %c0_8, %c0_9, %c0_10] : memref<1x1x18x4xbf16, #tpu.memory_space<vmem>>, vector<1x1x18x4xbf16>
    %5 = vector.shape_cast %4 : vector<1x1x18x4xbf16> to vector<1x18x4xbf16>
    %6 = tpu.concatenate %1, %3, %5 in 0 : vector<16x18x4xbf16>, vector<1x18x4xbf16>, vector<1x18x4xbf16> -> vector<18x18x4xbf16>
    %7 = vector.extract_strided_slice %6 {offsets = [0, 0, 0], sizes = [16, 16, 4], strides = [1, 1, 1]} : vector<18x18x4xbf16> to vector<16x16x4xbf16>
    %8 = vector.shape_cast %7 : vector<16x16x4xbf16> to vector<256x4xbf16>
    %9 = vector.extract_strided_slice %6 {offsets = [0, 1, 0], sizes = [16, 16, 4], strides = [1, 1, 1]} : vector<18x18x4xbf16> to vector<16x16x4xbf16>
    %10 = vector.shape_cast %9 : vector<16x16x4xbf16> to vector<256x4xbf16>
    %11 = vector.extract_strided_slice %6 {offsets = [0, 2, 0], sizes = [16, 16, 4], strides = [1, 1, 1]} : vector<18x18x4xbf16> to vector<16x16x4xbf16>
    %12 = vector.shape_cast %11 : vector<16x16x4xbf16> to vector<256x4xbf16>
    %13 = vector.extract_strided_slice %6 {offsets = [1, 0, 0], sizes = [16, 16, 4], strides = [1, 1, 1]} : vector<18x18x4xbf16> to vector<16x16x4xbf16>
    %14 = vector.shape_cast %13 : vector<16x16x4xbf16> to vector<256x4xbf16>
    %15 = vector.extract_strided_slice %6 {offsets = [1, 1, 0], sizes = [16, 16, 4], strides = [1, 1, 1]} : vector<18x18x4xbf16> to vector<16x16x4xbf16>
    %16 = vector.shape_cast %15 : vector<16x16x4xbf16> to vector<256x4xbf16>
    %17 = vector.extract_strided_slice %6 {offsets = [1, 2, 0], sizes = [16, 16, 4], strides = [1, 1, 1]} : vector<18x18x4xbf16> to vector<16x16x4xbf16>
    %18 = vector.shape_cast %17 : vector<16x16x4xbf16> to vector<256x4xbf16>
    %19 = vector.extract_strided_slice %6 {offsets = [2, 0, 0], sizes = [16, 16, 4], strides = [1, 1, 1]} : vector<18x18x4xbf16> to vector<16x16x4xbf16>
    %20 = vector.shape_cast %19 : vector<16x16x4xbf16> to vector<256x4xbf16>
    %21 = vector.extract_strided_slice %6 {offsets = [2, 1, 0], sizes = [16, 16, 4], strides = [1, 1, 1]} : vector<18x18x4xbf16> to vector<16x16x4xbf16>
    %22 = vector.shape_cast %21 : vector<16x16x4xbf16> to vector<256x4xbf16>
    %23 = vector.extract_strided_slice %6 {offsets = [2, 2, 0], sizes = [16, 16, 4], strides = [1, 1, 1]} : vector<18x18x4xbf16> to vector<16x16x4xbf16>
    %24 = vector.shape_cast %23 : vector<16x16x4xbf16> to vector<256x4xbf16>
    %25 = tpu.concatenate %8, %10, %12, %14, %16, %18, %20, %22, %24 in 1 : vector<256x4xbf16>, vector<256x4xbf16>, vector<256x4xbf16>, vector<256x4xbf16>, vector<256x4xbf16>, vector<256x4xbf16>, vector<256x4xbf16>, vector<256x4xbf16>, vector<256x4xbf16> -> vector<256x36xbf16>
    %c0_11 = arith.constant 0 : index
    %c0_12 = arith.constant 0 : index
    %26 = vector.load %arg5[%c0_11, %c0_12] : memref<36x128xbf16, #tpu.memory_space<vmem>>, vector<36x128xbf16>
    %cst = arith.constant dense<0.000000e+00> : vector<256x128xf32>
    %27 = tpu.matmul %25, %26, %cst {dimension_numbers = #tpu.dot_dimension_numbers<[1], [0], [0], [1], [0, 0, 1, 1], [], []>} : vector<256x36xbf16>, vector<36x128xbf16>, vector<256x128xf32> -> vector<256x128xf32>
    %cst_13 = arith.constant dense<0.000000e+00> : vector<128xf32>
    %28 = vector.multi_reduction <add>, %27, %cst_13 [0] : vector<256x128xf32> to vector<128xf32>
    %29 = vector.shape_cast %28 : vector<128xf32> to vector<1x128xf32>
    %c0_14 = arith.constant 0 : index
    %c0_15 = arith.constant 0 : index
    %c0_16 = arith.constant 0 : index
    %c0_17 = arith.constant 0 : index
    %30 = vector.load %arg6[%c0_14, %c0_15, %c0_16, %c0_17] : memref<1x1x2x128xf32, #tpu.memory_space<vmem>>, vector<1x1x1x128xf32>
    %31 = vector.shape_cast %30 : vector<1x1x1x128xf32> to vector<1x128xf32>
    %32 = vector.shape_cast %29 : vector<1x128xf32> to vector<1x1x1x128xf32>
    tpu.vector_store %arg6[%c0_14, %c0_15, %c0_16, %c0_17], %32 {strides = array<i32>} : memref<1x1x2x128xf32, #tpu.memory_space<vmem>>, vector<1x1x1x128xf32>,
    %33 = arith.mulf %27, %27 : vector<256x128xf32>
    %cst_18 = arith.constant dense<0.000000e+00> : vector<128xf32>
    %34 = vector.multi_reduction <add>, %33, %cst_18 [0] : vector<256x128xf32> to vector<128xf32>
    %35 = vector.shape_cast %34 : vector<128xf32> to vector<1x128xf32>
    %c0_19 = arith.constant 0 : index
    %c0_20 = arith.constant 0 : index
    %c1 = arith.constant 1 : index
    %c0_21 = arith.constant 0 : index
    %36 = vector.load %arg6[%c0_19, %c0_20, %c1, %c0_21] : memref<1x1x2x128xf32, #tpu.memory_space<vmem>>, vector<1x1x1x128xf32>
    %37 = vector.shape_cast %36 : vector<1x1x1x128xf32> to vector<1x128xf32>
    %38 = vector.shape_cast %35 : vector<1x128xf32> to vector<1x1x1x128xf32>
    tpu.vector_store %arg6[%c0_19, %c0_20, %c1, %c0_21], %38 {strides = array<i32>} : memref<1x1x2x128xf32, #tpu.memory_space<vmem>>, vector<1x1x1x128xf32>,
    return
  }
  func.func @transform_0(%arg0: i32, %arg1: i32) -> (i32, i32, i32, i32) {
    %c0_i32 = arith.constant 0 : i32
    %c0_i32_0 = arith.constant 0 : i32
    %c0_i32_1 = arith.constant 0 : i32
    return %arg0, %arg1, %c0_i32, %c0_i32_0 : i32, i32, i32, i32
  }
  func.func @transform_1(%arg0: i32, %arg1: i32) -> (i32, i32, i32, i32) {
    %c1_i32 = arith.constant 1 : i32
    %0 = arith.addi %arg1, %c1_i32 : i32
    %c16_i32 = arith.constant 16 : i32
    %1 = arith.muli %0, %c16_i32 : i32
    %c0_i32 = arith.constant 0 : i32
    %c0_i32_0 = arith.constant 0 : i32
    %c0_i32_1 = arith.constant 0 : i32
    return %arg0, %1, %c0_i32, %c0_i32_0 : i32, i32, i32, i32
  }
  func.func @transform_2(%arg0: i32, %arg1: i32) -> (i32, i32, i32, i32) {
    %c1_i32 = arith.constant 1 : i32
    %0 = arith.addi %arg1, %c1_i32 : i32
    %c16_i32 = arith.constant 16 : i32
    %1 = arith.muli %0, %c16_i32 : i32
    %c1_i32_0 = arith.constant 1 : i32
    %2 = arith.addi %1, %c1_i32_0 : i32
    %c0_i32 = arith.constant 0 : i32
    %c0_i32_1 = arith.constant 0 : i32
    %c0_i32_2 = arith.constant 0 : i32
    return %arg0, %2, %c0_i32, %c0_i32_1 : i32, i32, i32, i32
  }
  func.func @transform_3(%arg0: i32, %arg1: i32) -> (i32, i32) {
    %c0_i32 = arith.constant 0 : i32
    %c0_i32_0 = arith.constant 0 : i32
    %c0_i32_1 = arith.constant 0 : i32
    return %c0_i32, %c0_i32_0 : i32, i32
  }
  func.func @transform_4(%arg0: i32, %arg1: i32) -> (i32, i32, i32, i32) {
    %c0_i32 = arith.constant 0 : i32
    %c0_i32_0 = arith.constant 0 : i32
    %c0_i32_1 = arith.constant 0 : i32
    return %arg0, %arg1, %c0_i32, %c0_i32_0 : i32, i32, i32, i32
  }
}

</mosaic_0001>

<bundles_post_ra>
// kernel: tpu_custom_call.1
= control target key start
LH: loop header
LB: loop body
LE: loop exit
PB: predicated region body
PF: predicated region fallthrough
CT: control target
= control target key end

     0   :  { %9 = vsyncpa [#allocation3], 0  ;;  %s3571_s0 = inlined_call_operand.vmem [shape: bf16[2,18,18,4], index: 0, kind: input, shape index: {}]   ;;  %s3572_s1 = inlined_call_operand.vmem [shape: bf16[2,18,18,4], index: 1, kind: input, shape index: {}]   ;;  %s3573_s2 = inlined_call_operand.vmem [shape: bf16[2,18,18,4], index: 2, kind: input, shape index: {}]   ;;  %s3574_s3 = inlined_call_operand.vmem [shape: bf16[36,128], index: 3, kind: input, shape index: {}]   ;;  %s3575_s4 = inlined_call_operand.hbm [shape: f32[2,1,2,128], index: 4, kind: output, shape index: {}]  }
   0x1   :  { %11 = vsyncpa [#allocation3 + $0x1], 0  ;;  %s2560_s15 = smov 0   ;;  %s2562_s16 = smov 0  }
   0x2   :  { %s2564_s17 = smov 0   ;;  %s2566_s18 = smov 0  }
   0x3   :  { %s2568_s19 = smov 0   ;;  %s2570_s20 = smov 0  }
   0x4 LB: > { %s2188_s21 = sadd.s32 4294967295, %s2524_s20   ;;  %s2189_s22 = sadd.s32 4294967294, %s2524_s20   ;;  %s2524_s20 = sphi %s2570_s20, %s17_s20   ;;  %s2520_s19 = sphi %s2568_s19, %s3586_s19   ;;  %s2516_s18 = sphi %s2566_s18, %s3585_s18   ;;  %s2512_s17 = sphi %s2564_s17, %s3584_s17   ;;  %s2508_s16 = sphi %s2562_s16, %s3583_s16   ;;  %s2504_s15 = sphi %s2560_s15, %s3582_s15  }
   0x5   : > { %s29_s23 = sadd.s32 1, %s2520_s19  ;;  %s153_s24 = sadd.s32 1, %s2512_s17 }
   0x6   : > { %p31_p0 = scmp.ge.s32.totalorder %s29_s23, 2  ;;  %p163_p1 = scmp.ne.s32.totalorder %s2512_s17, %s2508_s16 }
   0x7   : > { %p164_p2 = scmp.eq.s32.totalorder %s2188_s21, 1  ;;  %p169_p3 = scmp.ne.s32.totalorder %s2508_s16, %s2504_s15 }
   0x8   : > { %s3588_s23 = smov (%p31_p0, %s29_s23), 0  ;;  %p170_p5 = scmp.eq.s32.totalorder %s2189_s22, 1 }
   0x9   : > { %p2600_p4 = por %p164_p2, %p163_p1  ;;  %s148_s26 = ssub.s32 %s2520_s19, %s3588_s23 }
   0xa   : > { %p2192_p6 = scmp.ge.s32.totalorder %s2524_s20, 1  ;;  %p151_p7 = scmp.eq.s32.totalorder %s148_s26, 0 }
   0xb   : > { %p2607_p8 = por %p170_p5, %p169_p3  ;;  %p249_p9 = scmp.lt.s32.totalorder %s2524_s20, 3 }
   0xc   : > { %s2613_s28 = scalar_select %p151_p7, %s2512_s17, %s153_s24  }
   0xd   : > { %p250_p10 = pnand %p2192_p6, %p249_p9 }
   0xe   : > { %p314_p11 = scmp.lt.s32.totalorder (!%p250_p10), %s2516_s18, 1  ;;  %s2526_s8 = smov (!%p250_p10), 12  }
   0xf   : > { %253 = sbr.rel (%p250_p10) target bundleno = 636 (0x27c), region = 36  ;;  %s2527_s9 = smov (!%p250_p10), 20  }
  0x10   : > { %s2528_s10 = smov (!%p250_p10), 8   ;;  %s2529_s11 = smov (!%p250_p10), 4  }
  0x11   : > { %s2530_s12 = smov (!%p250_p10), 16   ;;  %s2531_s13 = smov (!%p250_p10), 24  }
  0x12   : > { %s2532_s14 = smov (!%p250_p10), 28   ;;  %s2533_s21 = smov (!%p250_p10), 32  }
  0x13   : > { %s2534_s24 = smov (!%p250_p10), [#allocation2]  }
  0x14   : > { %s315_s29 = scalar_select %p314_p11, %s2516_s18, 1  ;;  %vm847_vm0 = vcmask 1042432   ;;  %vm848_vm1 = vcmask 1046532   ;;  %vm412_vm2 = vsmask.f32 3328  ;;  %vm1781_vm6 = vcmask 1041408  }
  0x15   : > { %vm413_vm3 = vsmask.f32 7440  ;;  %vm2645_vm4 = vmor %vm847_vm0, %vm848_vm1  ;;  %vm1448_vm7 = vcmask 31744   ;;  %vm1497_vm8 = vcmask 64512   ;;  %vm1530_vm9 = vcmask 97280  }
  0x16   : > { %s2617_s30 = smul.u32 216, %s315_s29  ;;  %vm2680_vm5 = vmor %vm412_vm2, %vm413_vm3  ;;  %vm1563_vm10 = vcmask 130048   ;;  %vm1596_vm11 = vcmask 162816   ;;  %vm1629_vm12 = vcmask 195584   ;;  %vm1662_vm13 = vcmask 228352  }
  0x17   : > { %vm1695_vm14 = vcmask 261120   ;;  %vm1748_vm15 = vcmask 293888  }
  0x18   : > { %s2623_s7 = scalar_lea.vmem %s3571_s0, %s2617_s30  ;;  %s2295_s29 = sadd.s32 204, %s2617_s30 }
  0x19   : > { %v2626_v0 = vld [vmem:[%s2623_s7 + $0x18] sm:$0xf]  ;;  %v2629_v1 = vld [vmem:[%s2623_s7 + $0x1c] sm:$0xf]  ;;  %v361_v2 = vld [vmem:[%s2623_s7 + $0xc] sm:$0xf] }
  0x1a   : > { %v477_v3 = vshrl.u32 %v2629_v1, 16  ;;  %v2635_v4 = vcombine.low %v2626_v0, %v2629_v1  ;;  %v464_v5 = vshrl.u32 %v2626_v0, 16  ;;  %v467_v6 = vshll.u32 %v2626_v0, 16  ;;  %v362_v7 = vld [vmem:[%s2623_s7 + $0x10] sm:$0xf] }
  0x1b   : > { %v449_v8 = vshll.u32 %v362_v7, 16  ;;  %v453_v9 = vshrl.u32 %v362_v7, 16  ;;  %v2640_v10 = vcombine.low %v361_v2, %v362_v7  ;;  %v440_v11 = vshrl.u32 %v361_v2, 16  ;;  %v363_v12 = vld [vmem:[%s2623_s7 + $0x14] sm:$0x1] }
  0x1c   : > { %1243 = vrot.lane.b32.xlu1 %v2635_v4, %s2526_s8  ;;  %v443_v14 = vshll.u32 %v361_v2, 16  ;;  %v2198_v15 = vrot.slane %v361_v2, 9  ;;  %v859_v16 = vrot.slane %v362_v7, 5  ;;  %v862_v17 = vrot.slane %v363_v12, 5  ;;  %v2652_v18 = vld [vmem:[%s2623_s7] sm:$0xf] }
  0x1d   : > { %v455_v19 = vrot.slane %v453_v9, 4  ;;  %1241 = vrot.lane.b32.xlu0 %v2640_v10, %s2526_s8  ;;  %v442_v20 = vrot.slane %v440_v11, 4  ;;  %v2657_v21 = vld [vmem:[%s2623_s7 + $0x4] sm:$0xf]  ;;  %v360_v22 = vld [vmem:[%s2623_s7 + $0x8] sm:$0x1] }
  0x1e   : > { %v445_v23 = vrot.slane %v443_v14, 5  ;;  %v860_v24 = vsel %vm2645_vm4, %v2198_v15, %v859_v16  ;;  %v861_v25 = vrot.slane %v859_v16, 4  ;;  %v2197_v26 = vrot.slane %v2652_v18, 9  ;;  %v366_v35 = vld [vmem:[%s2623_s7 + $0x20] sm:$0x1] }
  0x1f   : > { %v852_v27 = vrot.slane %v2657_v21, 5  ;;  %v855_v28 = vrot.slane %v360_v22, 5  ;;  %v416_v29 = vshrl.u32 %v2652_v18, 16  ;;  %v419_v30 = vshll.u32 %v2652_v18, 16  ;;  %v2694_v7 = vld [vmem:[%s2623_s7 + $0x24] sm:$0xf] }
  0x20   : > { %v863_v31 = vsel %vm2645_vm4, %v861_v25, %v862_v17  ;;  %v425_v32 = vshll.u32 %v2657_v21, 16  ;;  %v429_v33 = vshrl.u32 %v2657_v21, 16  ;;  %v435_v34 = vshll.u32 %v360_v22, 16 }
  0x21   : > { %v2248_v36 = vcombine.low %v860_v24, %v863_v31  ;;  %v853_v37 = vsel %vm2645_vm4, %v2197_v26, %v852_v27  ;;  %v854_v38 = vrot.slane %v852_v27, 4  ;;  %v418_v39 = vrot.slane %v416_v29, 4  ;;  %v369_v26 = vld [vmem:[%s2623_s7 + $0x2c] sm:$0x1] }
  0x22   : > { %v421_v40 = vrot.slane %v419_v30, 5  ;;  %v427_v41 = vrot.slane %v425_v32, 5  ;;  %v431_v42 = vrot.slane %v429_v33, 4  ;;  %v437_v43 = vrot.slane %v435_v34, 5 }
  0x23   : > { %1311 = vrot.lane.b32.xlu0 %v2248_v36, %s2527_s9  ;;  %v856_v44 = vsel %vm2645_vm4, %v854_v38, %v855_v28  ;;  %v2199_v45 = vrot.slane %v2626_v0, 9  ;;  %v866_v46 = vrot.slane %v2629_v1, 5  ;;  %v869_v47 = vrot.slane %v366_v35, 5 }
  0x24   : > { %v2247_v48 = vcombine.low %v853_v37, %v856_v44  ;;  %v422_v49 = vor.u32 %v421_v40, %v418_v39  ;;  %v432_v50 = vor.u32 %v431_v42, %v427_v41  ;;  %v446_v51 = vor.u32 %v445_v23, %v442_v20 }
  0x25   : > { %v867_v53 = vsel %vm2645_vm4, %v2199_v45, %v866_v46  ;;  %v868_v54 = vrot.slane %v866_v46, 4  ;;  %v451_v55 = vrot.slane %v449_v8, 5  ;;  %v459_v56 = vshll.u32 %v363_v12, 16  ;;  %v368_v12 = vld [vmem:[%s2623_s7 + $0x28] sm:$0xf] }
  0x26   : > { %1206 = vrot.lane.b32.xlu1 %v2247_v48, %s2528_s10  ;;  %v423_v57 = vrot.slane %v422_v49, 4  ;;  %v433_v58 = vrot.slane %v432_v50, 4  ;;  %v447_v59 = vrot.slane %v446_v51, 4  ;;  %v466_v60 = vrot.slane %v464_v5, 4  ;;  %v371_v48 = vld [vmem:[%s2623_s7 + $0x34] sm:$0xf] }
  0x27   : > { %v870_v61 = vsel %vm2645_vm4, %v868_v54, %v869_v47  ;;  %v456_v62 = vor.u32 %v455_v19, %v451_v55  ;;  %v461_v63 = vrot.slane %v459_v56, 5  ;;  %v469_v2 = vrot.slane %v467_v6, 5  ;;  %v370_v47 = vld [vmem:[%s2623_s7 + $0x30] sm:$0xf] }
  0x28   : > { %v428_v8 = vsel %vm2680_vm5, %v423_v57, %v427_v41  ;;  %v438_v9 = vsel %vm2680_vm5, %v433_v58, %v437_v43  ;;  %v2700_v11 = vcombine.low %v867_v53, %v870_v61  ;;  %v452_v5 = vsel %vm2680_vm5, %v447_v59, %v451_v55 }
  0x29   : > { %v2231_v14 = vcombine.low %v428_v8, %v438_v9  ;;  %v457_v15 = vrot.slane %v456_v62, 4  ;;  %v470_v16 = vor.u32 %v469_v2, %v466_v60  ;;  %v473_v0 = vshll.u32 %v2629_v1, 16  ;;  %v372_v60 = vld [vmem:[%s2623_s7 + $0x38] sm:$0x1] }
  0x2a   : > { %1208 = vrot.lane.b32.xlu1 %v2248_v36, %s2528_s10  ;;  %v479_v6 = vrot.slane %v477_v3, 4  ;;  %v483_v17 = vshll.u32 %v366_v35, 16  ;;  %v488_v19 = vshrl.u32 %v2694_v7, 16  ;;  %v491_v20 = vshll.u32 %v2694_v7, 16 }
  0x2b   : > { %1126 = vrot.lane.b32.xlu0 %v2231_v14, %s2529_s11  ;;  %v462_v22 = vsel %vm2680_vm5, %v457_v15, %v461_v63  ;;  %v471_v23 = vrot.slane %v470_v16, 4  ;;  %v475_v24 = vrot.slane %v473_v0, 5  ;;  %v501_v25 = vshrl.u32 %v368_v12, 16  ;;  %v2752_v14 = vld [vmem:[%s2623_s7 + $0x40] sm:$0xf] }
  0x2c   : > { %v2232_v27 = vcombine.low %v452_v5, %v462_v22  ;;  %v490_v28 = vrot.slane %v488_v19, 4  ;;  %v485_v1 = vrot.slane %v483_v17, 5  ;;  %v493_v3 = vrot.slane %v491_v20, 5 }
  0x2d   : > { %v480_v29 = vor.u32 %v479_v6, %v475_v24  ;;  %v497_v30 = vshll.u32 %v368_v12, 16  ;;  %v503_v31 = vrot.slane %v501_v25, 4  ;;  %v507_v32 = vshll.u32 %v369_v26, 16 }
  0x2e   : > { %1313 = vrot.lane.b32.xlu1 %v2700_v11, %s2527_s9  ;;  %v476_v33 = vsel %vm2680_vm5, %v471_v23, %v475_v24  ;;  %v494_v35 = vor.u32 %v493_v3, %v490_v28  ;;  %v2725_v43 = vcombine.low %v2694_v7, %v368_v12  ;;  %v873_v44 = vrot.slane %v368_v12, 5  ;;  %v2749_v12 = vld [vmem:[%s2623_s7 + $0x3c] sm:$0xf] }
  0x2f   : > { %1128 = vrot.lane.b32.xlu0 %v2232_v27, %s2529_s11  ;;  %v481_v34 = vrot.slane %v480_v29, 4  ;;  %v499_v36 = vrot.slane %v497_v30, 5  ;;  %v509_v40 = vrot.slane %v507_v32, 5  ;;  %v2200_v50 = vrot.slane %v2694_v7, 9 }
  0x30   : > { %v495_v38 = vrot.slane %v494_v35, 4  ;;  %v875_v51 = vrot.slane %v873_v44, 4  ;;  %v876_v53 = vrot.slane %v369_v26, 5  ;;  %v512_v54 = vshrl.u32 %v370_v47, 16 }
  0x31   : > { %v486_v37 = vsel %vm2680_vm5, %v481_v34, %v485_v1  ;;  %v504_v39 = vor.u32 %v503_v31, %v499_v36  ;;  %v515_v55 = vshll.u32 %v370_v47, 16  ;;  %v525_v56 = vshrl.u32 %v371_v48, 16  ;;  %v375_v31 = vld [vmem:[%s2623_s7 + $0x44] sm:$0x1] }
  0x32   : > { %v2233_v41 = vcombine.low %v476_v33, %v486_v37  ;;  %v500_v45 = vsel %vm2680_vm5, %v495_v38, %v499_v36  ;;  %v521_v57 = vshll.u32 %v371_v48, 16  ;;  %v874_v58 = vsel %vm2645_vm4, %v2200_v50, %v873_v44 }
  0x33   : > { %1276 = vrot.lane.b32.xlu0 %v2232_v27, %s2530_s12  ;;  %v505_v42 = vrot.slane %v504_v39, 4  ;;  %v877_v59 = vsel %vm2645_vm4, %v875_v51, %v876_v53  ;;  %v514_v61 = vrot.slane %v512_v54, 4  ;;  %v517_v62 = vrot.slane %v515_v55, 5 }
  0x34   : > { %1278 = vrot.lane.b32.xlu1 %v2233_v41, %s2530_s12  ;;  %v523_v63 = vrot.slane %v521_v57, 5  ;;  %v527_v2 = vrot.slane %v525_v56, 4  ;;  %v2250_v7 = vcombine.low %v874_v58, %v877_v59  ;;  %v531_v8 = vshll.u32 %v372_v60, 16  ;;  %v2439_v59 = vld [vmem:[%s3574_s3 + $0x8] sm:$0xff]  }
  0x35   : > { %v510_v46 = vsel %vm2680_vm5, %v505_v42, %v509_v40  ;;  %v518_v9 = vor.u32 %v517_v62, %v514_v61  ;;  %v880_v16 = vrot.slane %v371_v48, 5  ;;  %v536_v0 = vshrl.u32 %v2749_v12, 16 }
  0x36   : > { %v2234_v49 = vcombine.low %v500_v45, %v510_v46  ;;  %v528_v5 = vor.u32 %v527_v2, %v523_v63  ;;  %v533_v15 = vrot.slane %v531_v8, 5  ;;  %v539_v6 = vshll.u32 %v2749_v12, 16 }
  0x37   : > { %1346 = vrot.lane.b32.xlu0 %v2635_v4, %s2531_s13  ;;  %v519_v17 = vrot.slane %v518_v9, 4  ;;  %v549_v20 = vshrl.u32 %v2752_v14, 16  ;;  %v545_v22 = vshll.u32 %v2752_v14, 16  ;;  %v2762_v23 = vcombine.low %v370_v47, %v371_v48  ;;  %v2800_v48 = vld [vmem:[%s2623_s7 + $0x4c] sm:$0xf] }
  0x38   : > { %1348 = vrot.lane.b32.xlu1 %v2725_v43, %s2531_s13  ;;  %v529_v19 = vrot.slane %v528_v5, 4  ;;  %v2201_v24 = vrot.slane %v370_v47, 9  ;;  %v882_v25 = vrot.slane %v880_v16, 4  ;;  %v883_v26 = vrot.slane %v372_v60, 5  ;;  %v2797_v47 = vld [vmem:[%s2623_s7 + $0x48] sm:$0xf] }
  0x39   : > { %v538_v27 = vrot.slane %v536_v0, 4  ;;  %v541_v28 = vrot.slane %v539_v6, 5  ;;  %v524_v29 = vsel %vm2680_vm5, %v519_v17, %v523_v63  ;;  %v547_v3 = vrot.slane %v545_v22, 5  ;;  %v378_v63 = vld [vmem:[%s2623_s7 + $0x50] sm:$0x1]  ;;  %v2440_v5 = vld [vmem:[%s3574_s3] sm:$0xff]  }
  0x3a   : > { %v534_v1 = vsel %vm2680_vm5, %v529_v19, %v533_v15  ;;  %v551_v30 = vrot.slane %v549_v20, 4  ;;  %v881_v32 = vsel %vm2645_vm4, %v2201_v24, %v880_v16  ;;  %v884_v33 = vsel %vm2645_vm4, %v882_v25, %v883_v26  ;;  %v2834_v0 = vld [vmem:[%s2623_s7 + $0x54] sm:$0xf]  ;;  %v2837_v6 = vld [vmem:[%s2623_s7 + $0x58] sm:$0xf] }
  0x3b   : > { %1381 = vrot.lane.b32.xlu0 %v2233_v41, %s2532_s14  ;;  %v542_v34 = vor.u32 %v541_v28, %v538_v27  ;;  %v555_v36 = vshll.u32 %v375_v31, 16  ;;  %v2780_v37 = vcombine.low %v881_v32, %v884_v33  ;;  %v887_v42 = vrot.slane %v2752_v14, 5 }
  0x3c   : > { %1383 = vrot.lane.b32.xlu1 %v2234_v49, %s2532_s14  ;;  %v552_v35 = vor.u32 %v551_v30, %v547_v3  ;;  %v2215_v44 = vcombine.low %v2652_v18, %v2657_v21  ;;  %v2202_v50 = vrot.slane %v2749_v12, 9  ;;  %v890_v54 = vrot.slane %v375_v31, 5 }
  0x3d   : > { %v543_v38 = vrot.slane %v542_v34, 4  ;;  %v557_v40 = vrot.slane %v555_v36, 5  ;;  %v889_v53 = vrot.slane %v887_v42, 4  ;;  %v560_v55 = vshrl.u32 %v2797_v47, 16 }
  0x3e   : > { %v553_v39 = vrot.slane %v552_v35, 4  ;;  %v563_v56 = vshll.u32 %v2797_v47, 16  ;;  %v573_v57 = vshrl.u32 %v2800_v48, 16  ;;  %v569_v58 = vshll.u32 %v2800_v48, 16  ;;  %v381_v35 = vld [vmem:[%s2623_s7 + $0x5c] sm:$0x1] }
  0x3f   : > { %1416 = vrot.lane.b32.xlu0 %v2700_v11, %s2533_s21  ;;  %v548_v45 = vsel %vm2680_vm5, %v543_v38, %v547_v3  ;;  %v888_v61 = vsel %vm2645_vm4, %v2202_v50, %v887_v42  ;;  %v891_v62 = vsel %vm2645_vm4, %v889_v53, %v890_v54  ;;  %v562_v2 = vrot.slane %v560_v55, 4  ;;  %v382_v54 = vld [vmem:[%s2623_s7 + $0x60] sm:$0xf]  ;;  %v383_v55 = vld [vmem:[%s2623_s7 + $0x64] sm:$0xf] }
  0x40   : > { %1130 = vrot.lane.b32.xlu1 %v2233_v41, %s2529_s11  ;;  %v2787_v41 = vcombine.low %v2749_v12, %v2752_v14  ;;  %v558_v46 = vsel %vm2680_vm5, %v553_v39, %v557_v40  ;;  %v571_v8 = vrot.slane %v569_v58, 5  ;;  %v575_v9 = vrot.slane %v573_v57, 4 }
  0x41   : > { %v2810_v51 = vcombine.low %v548_v45, %v558_v46  ;;  %v2252_v12 = vcombine.low %v888_v61, %v891_v62  ;;  %v579_v14 = vshll.u32 %v378_v63, 16  ;;  %v894_v19 = vrot.slane %v2800_v48, 5 }
  0x42   : > { %v576_v16 = vor.u32 %v575_v9, %v571_v8  ;;  %v584_v20 = vshrl.u32 %v2834_v0, 16  ;;  %v587_v22 = vshll.u32 %v2834_v0, 16  ;;  %v597_v26 = vshrl.u32 %v2837_v6, 16 }
  0x43   : > { %1418 = vrot.lane.b32.xlu0 %v2250_v7, %s2533_s21  ;;  %v581_v17 = vrot.slane %v579_v14, 5  ;;  %v593_v27 = vshll.u32 %v2837_v6, 16  ;;  %v2851_v28 = vcombine.low %v2797_v47, %v2800_v48  ;;  %v897_v3 = vrot.slane %v378_v63, 5 }
  0x44   : > { %1132 = vrot.lane.b32.xlu1 %v2234_v49, %s2529_s11  ;;  %v577_v25 = vrot.slane %v576_v16, 4  ;;  %v586_v30 = vrot.slane %v584_v20, 4  ;;  %v589_v31 = vrot.slane %v587_v22, 5  ;;  %v599_v34 = vrot.slane %v597_v26, 4 }
  0x45   : > { %v595_v33 = vrot.slane %v593_v27, 5  ;;  %v603_v42 = vshll.u32 %v381_v35, 16  ;;  %v901_v50 = vrot.slane %v2837_v6, 5  ;;  %v904_v57 = vrot.slane %v381_v35, 5 }
  0x46   : > { %v582_v32 = vsel %vm2680_vm5, %v577_v25, %v581_v17  ;;  %v590_v39 = vor.u32 %v589_v31, %v586_v30  ;;  %v611_v61 = vshll.u32 %v382_v54, 16  ;;  %v621_v62 = vshrl.u32 %v383_v55, 16  ;;  %v2899_v17 = vld [vmem:[%s2623_s7 + $0x6c] sm:$0xf] }
  0x47   : > { %1210 = vrot.lane.b32.xlu0 %v2700_v11, %s2528_s10  ;;  %v2235_v11 = vcombine.low %v524_v29, %v534_v1  ;;  %v2203_v29 = vrot.slane %v2797_v47, 9  ;;  %v896_v1 = vrot.slane %v894_v19, 4  ;;  %v600_v40 = vor.u32 %v599_v34, %v595_v33 }
  0x48   : > { %1212 = vrot.lane.b32.xlu1 %v2250_v7, %s2528_s10  ;;  %v591_v46 = vrot.slane %v590_v39, 4  ;;  %v605_v48 = vrot.slane %v603_v42, 5  ;;  %v617_v63 = vshll.u32 %v383_v55, 16  ;;  %v613_v9 = vrot.slane %v611_v61, 5  ;;  %v2951_v61 = vld [vmem:[%s2623_s7 + $0x7c] sm:$0xf] }
  0x49   : > { %v898_v38 = vsel %vm2645_vm4, %v896_v1, %v897_v3  ;;  %v601_v47 = vrot.slane %v600_v40, 4  ;;  %v623_v14 = vrot.slane %v621_v62, 4  ;;  %v632_v25 = vshrl.u32 %v2899_v17, 16 }
  0x4a   : > { %v596_v53 = vsel %vm2680_vm5, %v591_v46, %v595_v33  ;;  %v635_v27 = vshll.u32 %v2899_v17, 16  ;;  %v2911_v3 = vcombine.low %v382_v54, %v383_v55  ;;  %v2205_v30 = vrot.slane %v382_v54, 9 }
  0x4b   : > { %1245 = vrot.lane.b32.xlu0 %v2725_v43, %s2526_s8  ;;  %v634_v33 = vrot.slane %v632_v25, 4 }
  0x4c   : > { %1247 = vrot.lane.b32.xlu1 %v2762_v23, %s2526_s8  ;;  %v637_v35 = vrot.slane %v635_v27, 5 }
  0x4f   : > { %1280 = vrot.lane.b32.xlu0 %v2234_v49, %s2530_s12  ;;  %v2437_v49 = vld [vmem:[%s3574_s3 + $0x10] ss:$0 sps:$4 sm:$0x33]  }
  0x50   : > { %1282 = vrot.lane.b32.xlu1 %v2235_v11, %s2530_s12  ;;  %2359 = vmatprep.subr.msk.bf16.mxu0 %vm1781_vm6, %v2437_v49  ;;  %v1783_v60 = vsel %vm1781_vm6, %v2437_v49, 0 }
  0x51   : > { %2360 = vmatprep.subr.msk.bf16.mxu1 %vm1781_vm6, %v2437_v49  ;;  %2316 = vmatpush3.bf16.msra.mxu0 %v1783_v60  ;;  %v2875_v49 = vcombine.low %v2834_v0, %v2837_v6 }
  0x52   : > { %2317 = vmatprep.subr.bf16.mxu0 %v2439_v59  ;;  %2356 = vmatpush3.bf16.msra.mxu1 %v1783_v60  ;;  %v608_v60 = vshrl.u32 %v382_v54, 16 }
  0x53   : > { %1315 = vrot.lane.b32.xlu0 %v2250_v7, %s2527_s9  ;;  %v565_v7 = vrot.slane %v563_v56, 5  ;;  %2354 = vmatprep.subr.bf16.mxu1 %v2439_v59  ;;  %v2204_v56 = vrot.slane %v2834_v0, 9 }
  0x54   : > { %1317 = vrot.lane.b32.xlu1 %v2780_v37, %s2527_s9 }
  0x55   : > { %2318 = vmatpush3.bf16.msra.mxu0 %v2439_v59  ;;  %v566_v15 = vor.u32 %v565_v7, %v562_v2  ;;  %v902_v2 = vsel %vm2645_vm4, %v2204_v56, %v901_v50 }
  0x56   : > { %2319 = vmatprep.subr.bf16.mxu0 %v2440_v5  ;;  %2357 = vmatpush3.bf16.msra.mxu1 %v2439_v59  ;;  %v903_v59 = vrot.slane %v901_v50, 4 }
  0x57   : > { %1350 = vrot.lane.b32.xlu0 %v2762_v23, %s2531_s13  ;;  %2355 = vmatprep.subr.bf16.mxu1 %v2440_v5  ;;  %v567_v24 = vrot.slane %v566_v15, 4 }
  0x58   : > { %1352 = vrot.lane.b32.xlu1 %v2787_v41, %s2531_s13  ;;  %v905_v7 = vsel %vm2645_vm4, %v903_v59, %v904_v57 }
  0x59   : > { %2320 = vmatpush3.bf16.msra.mxu0 %v2440_v5  ;;  %v2254_v15 = vcombine.low %v902_v2, %v905_v7 }
  0x5a   : > { %2358 = vmatpush3.bf16.msra.mxu1 %v2440_v5  ;;  %v384_v5 = vld [vmem:[%s2623_s7 + $0x68] sm:$0x1] }
  0x5b   : > { %1385 = vrot.lane.b32.xlu0 %v2235_v11, %s2532_s14  ;;  %v627_v0 = vshll.u32 %v384_v5, 16 }
  0x5c   : > { %1387 = vrot.lane.b32.xlu1 %v2810_v51, %s2532_s14 }
  0x5d   : > { %v629_v22 = vrot.slane %v627_v0, 5 }
  0x5f   : > { %1420 = vrot.lane.b32.xlu0 %v2780_v37, %s2533_s21 }
  0x60   : > { %1134 = vrot.lane.b32.xlu1 %v2235_v11, %s2529_s11  ;;  %v572_v11 = vsel %vm2680_vm5, %v567_v24, %v571_v8  ;;  %v610_v8 = vrot.slane %v608_v60, 4  ;;  %v908_v24 = vrot.slane %v383_v55, 5  ;;  %v2948_v60 = vld [vmem:[%s2623_s7 + $0x78] sm:$0xf] }
  0x61   : > { %v2237_v36 = vcombine.low %v572_v11, %v582_v32  ;;  %v911_v32 = vrot.slane %v384_v5, 5  ;;  %v656_v5 = vshrl.u32 %v2948_v60, 16  ;;  %v3006_v18 = vcombine.low %v2948_v60, %v2951_v61 }
  0x62   : > { %v614_v16 = vor.u32 %v613_v9, %v610_v8  ;;  %v910_v11 = vrot.slane %v908_v24, 4  ;;  %v909_v40 = vsel %vm2645_vm4, %v2205_v30, %v908_v24  ;;  %v2207_v21 = vrot.slane %v2948_v60, 9 }
  0x63   : > { %1422 = vrot.lane.b32.xlu0 %v2252_v12, %s2533_s21 }
  0x64   : > { %1136 = vrot.lane.b32.xlu1 %v2810_v51, %s2529_s11  ;;  %v615_v20 = vrot.slane %v614_v16, 4  ;;  %v912_v42 = vsel %vm2645_vm4, %v910_v11, %v911_v32  ;;  %v2982_v11 = vld [vmem:[%s2623_s7 + $0x84] sm:$0xf]  ;;  %v2985_v32 = vld [vmem:[%s2623_s7 + $0x88] sm:$0xf] }
  0x67   : > { %1214 = vrot.lane.b32.xlu0 %v2780_v37, %s2528_s10  ;;  %v895_v37 = vsel %vm2645_vm4, %v2203_v29, %v894_v19  ;;  %v2902_v19 = vld [vmem:[%s2623_s7 + $0x70] sm:$0xf] }
  0x68   : > { %1216 = vrot.lane.b32.xlu1 %v2252_v12, %s2528_s10  ;;  %v2253_v45 = vcombine.low %v895_v37, %v898_v38  ;;  %v645_v29 = vshrl.u32 %v2902_v19, 16  ;;  %v641_v1 = vshll.u32 %v2902_v19, 16  ;;  %v387_v38 = vld [vmem:[%s2623_s7 + $0x74] sm:$0x1]  ;;  %v2940_v56 = vcombine.low %v2899_v17, %v2902_v19 }
  0x69   : > { %v915_v57 = vrot.slane %v2902_v19, 5  ;;  %v918_v2 = vrot.slane %v387_v38, 5 }
  0x6a   : > { %v647_v37 = vrot.slane %v645_v29, 4 }
  0x6b   : > { %1249 = vrot.lane.b32.xlu0 %v2787_v41, %s2526_s8  ;;  %v917_v9 = vrot.slane %v915_v57, 4 }
  0x6c   : > { %1251 = vrot.lane.b32.xlu1 %v2851_v28, %s2526_s8 }
  0x6f   : > { %1284 = vrot.lane.b32.xlu0 %v2810_v51, %s2530_s12  ;;  %v606_v51 = vsel %vm2680_vm5, %v601_v47, %v605_v48  ;;  %v651_v47 = vshll.u32 %v387_v38, 16  ;;  %v2929_v48 = vcombine.low %v909_v40, %v912_v42  ;;  %v693_v42 = vshrl.u32 %v2985_v32, 16 }
  0x70   : > { %1286 = vrot.lane.b32.xlu1 %v2237_v36, %s2530_s12  ;;  %v2238_v58 = vcombine.low %v596_v53, %v606_v51 }
  0x71   : > { %v653_v54 = vrot.slane %v651_v47, 5 }
  0x73   : > { %1319 = vrot.lane.b32.xlu0 %v2252_v12, %s2527_s9  ;;  %v619_v12 = vrot.slane %v617_v63, 5  ;;  %v2206_v63 = vrot.slane %v2899_v17, 9  ;;  %v658_v17 = vrot.slane %v656_v5, 4 }
  0x74   : > { %1321 = vrot.lane.b32.xlu1 %v2253_v45, %s2527_s9 }
  0x75   : > { %v624_v6 = vor.u32 %v623_v14, %v619_v12  ;;  %v620_v31 = vsel %vm2680_vm5, %v615_v20, %v619_v12  ;;  %v659_v12 = vshll.u32 %v2948_v60, 16  ;;  %v669_v14 = vshrl.u32 %v2951_v61, 16 }
  0x76   : > { %v916_v0 = vsel %vm2645_vm4, %v2206_v63, %v915_v57 }
  0x77   : > { %1354 = vrot.lane.b32.xlu0 %v2851_v28, %s2531_s13  ;;  %v625_v26 = vrot.slane %v624_v6, 4  ;;  %v919_v6 = vsel %vm2645_vm4, %v917_v9, %v918_v2  ;;  %v661_v19 = vrot.slane %v659_v12, 5  ;;  %v671_v25 = vrot.slane %v669_v14, 4  ;;  %v3018_v2 = vld [vmem:[%s2623_s7 + $0x8c] sm:$0x1] }
  0x78   : > { %1356 = vrot.lane.b32.xlu1 %v2875_v49, %s2531_s13 }
  0x79   : > { %v630_v34 = vsel %vm2680_vm5, %v625_v26, %v629_v22  ;;  %v390_v22 = vld [vmem:[%s2623_s7 + $0x80] sm:$0x1]  ;;  %v2976_v26 = vcombine.low %v916_v0, %v919_v6  ;;  %v662_v29 = vor.u32 %v661_v19, %v658_v17  ;;  %v699_v6 = vshll.u32 %v3018_v2, 16 }
  0x7a   : > { %v2239_v39 = vcombine.low %v620_v31, %v630_v34 }
  0x7b   : > { %1389 = vrot.lane.b32.xlu0 %v2237_v36, %s2532_s14  ;;  %v663_v34 = vrot.slane %v662_v29, 4 }
  0x7c   : > { %1391 = vrot.lane.b32.xlu1 %v2238_v58, %s2532_s14 }
  0x7f   : > { %1424 = vrot.lane.b32.xlu0 %v2253_v45, %s2533_s21 }
  0x80   : > { %1138 = vrot.lane.b32.xlu1 %v2237_v36, %s2529_s11  ;;  %v643_v36 = vrot.slane %v641_v1, 5  ;;  %v675_v1 = vshll.u32 %v390_v22, 16 }
  0x82   : > { %v648_v46 = vor.u32 %v647_v37, %v643_v36  ;;  %v683_v37 = vshll.u32 %v2982_v11, 16 }
  0x83   : > { %1426 = vrot.lane.b32.xlu0 %v2254_v15, %s2533_s21 }
  0x84   : > { %1140 = vrot.lane.b32.xlu1 %v2238_v58, %s2529_s11  ;;  %v649_v51 = vrot.slane %v648_v46, 4 }
  0x86   : > { %v654_v59 = vsel %vm2680_vm5, %v649_v51, %v653_v54 }
  0x87   : > { %1218 = vrot.lane.b32.xlu0 %v2253_v45, %s2528_s10  ;;  %v638_v45 = vor.u32 %v637_v35, %v634_v33  ;;  %v922_v33 = vrot.slane %v2951_v61, 5  ;;  %v677_v35 = vrot.slane %v675_v1, 5  ;;  %v701_v1 = vrot.slane %v699_v6, 5 }
  0x88   : > { %1220 = vrot.lane.b32.xlu1 %v2254_v15, %s2528_s10 }
  0x89   : > { %v639_v53 = vrot.slane %v638_v45, 4  ;;  %v689_v45 = vshll.u32 %v2985_v32, 16  ;;  %v923_v12 = vsel %vm2645_vm4, %v2207_v21, %v922_v33 }
  0x8b   : > { %1253 = vrot.lane.b32.xlu0 %v2875_v49, %s2526_s8 }
  0x8c   : > { %1255 = vrot.lane.b32.xlu1 %v2911_v3, %s2526_s8 }
  0x8e   : > { %v2933_v55 = vpop.permute.xlu1 %1243 }
  0x8f   : > { %1288 = vrot.lane.b32.xlu0 %v2238_v58, %s2530_s12  ;;  %v2931_v50 = vpop.permute.xlu0 %1241  ;;  %v644_v58 = vsel %vm2680_vm5, %v639_v53, %v643_v36  ;;  %v680_v36 = vshrl.u32 %v2982_v11, 16 }
  0x90   : > { %1290 = vrot.lane.b32.xlu1 %v2239_v39, %s2530_s12  ;;  %v2960_v8 = vcombine.low %v644_v58, %v654_v59  ;;  %v685_v58 = vrot.slane %v683_v37, 5  ;;  %v691_v59 = vrot.slane %v689_v45, 5  ;;  %v932_v45 = vrot.slane %v3018_v2, 5 }
  0x91   : > { %v682_v54 = vrot.slane %v680_v36, 4 }
  0x93   : > { %1323 = vrot.lane.b32.xlu0 %v2254_v15, %s2527_s9  ;;  %v665_v15 = vshll.u32 %v2951_v61, 16  ;;  %v695_v61 = vrot.slane %v693_v42, 4  ;;  %v3075_v42 = vld [vmem:[%s2623_s7 + $0x94] sm:$0xf] }
  0x94   : > { %1325 = vrot.lane.b32.xlu1 %v2929_v48, %s2527_s9 }
  0x95   : > { %v2955_v62 = vpop.permute.xlu0 %1311  ;;  %v667_v24 = vrot.slane %v665_v15, 5  ;;  %v696_v0 = vor.u32 %v695_v61, %v691_v59  ;;  %v396_v61 = vld [vmem:[%s2623_s7 + $0x98] sm:$0x1] }
  0x97   : > { %1358 = vrot.lane.b32.xlu0 %v2911_v3, %s2531_s13  ;;  %v672_v31 = vor.u32 %v671_v25, %v667_v24  ;;  %v668_v51 = vsel %vm2680_vm5, %v663_v34, %v667_v24  ;;  %v3060_v34 = vcombine.low %v2982_v11, %v2985_v32 }
  0x98   : > { %1360 = vrot.lane.b32.xlu1 %v2940_v56, %s2531_s13  ;;  %v1207_v7 = vpop.permute.xlu1 %1206 }
  0x99   : > { %v673_v40 = vrot.slane %v672_v31, 4 }
  0x9b   : > { %1393 = vrot.lane.b32.xlu0 %v2239_v39, %s2532_s14 }
  0x9c   : > { %1395 = vrot.lane.b32.xlu1 %v2960_v8, %s2532_s14  ;;  %v1209_v16 = vpop.permute.xlu1 %1208 }
  0x9d   : > { %v1127_v20 = vpop.permute.xlu0 %1126 }
  0x9e   : > { %v1451_v38 = vsel %vm1448_vm7, %v2215_v44, %v1127_v20  ;;  %v925_v44 = vrot.slane %v390_v22, 5 }
  0x9f   : > { %1428 = vrot.lane.b32.xlu0 %v2929_v48, %s2533_s21  ;;  %v1499_v53 = vsel %vm1497_vm8, %v1451_v38, %v1207_v7  ;;  %v3069_v38 = vld [vmem:[%s2623_s7 + $0x90] sm:$0xf] }
  0xa0   : > { %1142 = vrot.lane.b32.xlu1 %v2239_v39, %s2529_s11  ;;  %v2979_v27 = vpop.permute.xlu1 %1313  ;;  %v1532_v7 = vsel %vm1530_vm9, %v1499_v53, %v2931_v50  ;;  %v704_v21 = vshrl.u32 %v3069_v38, 16 }
  0xa1   : > { %v1129_v30 = vpop.permute.xlu0 %1128 }
  0xa2   : > { %v1454_v47 = vsel %vm1448_vm7, %v2640_v10, %v1129_v30  ;;  %v924_v10 = vrot.slane %v922_v33, 4 }
  0xa3   : > { %1430 = vrot.lane.b32.xlu0 %v2976_v26, %s2533_s21  ;;  %v1501_v60 = vsel %vm1497_vm8, %v1454_v47, %v1209_v16  ;;  %v686_v16 = vor.u32 %v685_v58, %v682_v54 }
  0xa4   : > { %1144 = vrot.lane.b32.xlu1 %v2960_v8, %s2529_s11  ;;  %v926_v14 = vsel %vm2645_vm4, %v924_v10, %v925_v44  ;;  %v1534_v50 = vsel %vm1530_vm9, %v1501_v60, %v2933_v55  ;;  %v707_v44 = vshll.u32 %v3069_v38, 16  ;;  %v713_v10 = vshll.u32 %v3075_v42, 16 }
  0xa5   : > { %v1277_v39 = vpop.permute.xlu0 %1276  ;;  %v3044_v55 = vcombine.low %v923_v12, %v926_v14  ;;  %v687_v29 = vrot.slane %v686_v16, 4  ;;  %v723_v12 = vshll.u32 %v396_v61, 16 }
  0xa6   : > { %v1279_v46 = vpop.permute.xlu1 %1278  ;;  %v1565_v9 = vsel %vm1563_vm10, %v1532_v7, %v1277_v39  ;;  %v709_v58 = vrot.slane %v707_v44, 5  ;;  %v715_v60 = vrot.slane %v713_v10, 5 }
  0xa7   : > { %1222 = vrot.lane.b32.xlu0 %v2929_v48, %s2528_s10  ;;  %v678_v48 = vsel %vm2680_vm5, %v673_v40, %v677_v35  ;;  %v1598_v19 = vsel %vm1596_vm11, %v1565_v9, %v2955_v62  ;;  %v1567_v20 = vsel %vm1563_vm10, %v1534_v50, %v1279_v46  ;;  %v697_v62 = vrot.slane %v696_v0, 4  ;;  %v3111_v0 = vld [vmem:[%s2623_s7 + $0xa0] sm:$0xf] }
  0xa8   : > { %1224 = vrot.lane.b32.xlu1 %v2976_v26, %s2528_s10  ;;  %v3027_v5 = vcombine.low %v668_v51, %v678_v48  ;;  %v1600_v31 = vsel %vm1596_vm11, %v1567_v20, %v2979_v27  ;;  %v929_v35 = vrot.slane %v2985_v32, 5  ;;  %v692_v27 = vsel %vm2680_vm5, %v687_v29, %v691_v59 }
  0xa9   : > { %v1347_v57 = vpop.permute.xlu0 %1346  ;;  %v2208_v32 = vrot.slane %v2982_v11, 9  ;;  %v717_v51 = vshrl.u32 %v3075_v42, 16  ;;  %v706_v48 = vrot.slane %v704_v21, 4  ;;  %v737_v29 = vshll.u32 %v3111_v0, 16 }
  0xaa   : > { %v1349_v63 = vpop.permute.xlu1 %1348  ;;  %v1631_v22 = vsel %vm1629_vm12, %v1598_v19, %v1347_v57  ;;  %v931_v47 = vrot.slane %v929_v35, 4  ;;  %v936_v19 = vrot.slane %v3075_v42, 5 }
  0xab   : > { %1257 = vrot.lane.b32.xlu0 %v2940_v56, %s2526_s8  ;;  %v1633_v33 = vsel %vm1629_vm12, %v1600_v31, %v1349_v63  ;;  %v930_v11 = vsel %vm2645_vm4, %v2208_v32, %v929_v35  ;;  %v719_v63 = vrot.slane %v717_v51, 4  ;;  %v710_v9 = vor.u32 %v709_v58, %v706_v48 }
  0xac   : > { %1259 = vrot.lane.b32.xlu1 %v3006_v18, %s2526_s8  ;;  %v933_v57 = vsel %vm2645_vm4, %v931_v47, %v932_v45  ;;  %v939_v35 = vrot.slane %v396_v61, 5 }
  0xad   : > { %v1382_v15 = vpop.permute.xlu0 %1381  ;;  %v3103_v7 = vcombine.low %v930_v11, %v933_v57  ;;  %v720_v50 = vor.u32 %v719_v63, %v715_v60  ;;  %v711_v6 = vrot.slane %v710_v9, 4 }
  0xae   : > { %v1384_v17 = vpop.permute.xlu1 %1383  ;;  %v1664_v24 = vsel %vm1662_vm13, %v1631_v22, %v1382_v15  ;;  %v3108_v15 = vld [vmem:[%s2623_s7 + $0x9c] sm:$0xf] }
  0xaf   : > { %1292 = vrot.lane.b32.xlu0 %v2960_v8, %s2530_s12  ;;  %v1666_v36 = vsel %vm1662_vm13, %v1633_v33, %v1384_v17  ;;  %v725_v17 = vrot.slane %v723_v12, 5  ;;  %v721_v22 = vrot.slane %v720_v50, 4  ;;  %v716_v31 = vsel %vm2680_vm5, %v711_v6, %v715_v60 }
  0xb0   : > { %1294 = vrot.lane.b32.xlu1 %v3027_v5, %s2530_s12  ;;  %v938_v33 = vrot.slane %v936_v19, 4 }
  0xb1   : > { %v1417_v25 = vpop.permute.xlu0 %1416 }
  0xb2   : > { %v3047_v30 = vpop.permute.xlu1 %1130  ;;  %v1697_v8 = vsel %vm1695_vm14, %v1664_v24, %v1417_v25  ;;  %v731_v24 = vshll.u32 %v3108_v15, 16  ;;  %v741_v25 = vshrl.u32 %v3111_v0, 16 }
  0xb3   : > { %1327 = vrot.lane.b32.xlu0 %v2976_v26, %s2527_s9  ;;  %2321 = vmatprep.mubr.msk.bf16.mxu0 %vm1748_vm15, %v1697_v8  ;;  %v702_v26 = vsel %vm2680_vm5, %v697_v62, %v701_v1  ;;  %v3126_v1 = vcombine.low %v3069_v38, %v3075_v42  ;;  %v2209_v8 = vrot.slane %v3069_v38, 9  ;;  %v1457_v38 = vsel %vm1448_vm7, %v2635_v4, %v3047_v30 }
  0xb4   : > { %1329 = vrot.lane.b32.xlu1 %v3044_v55, %s2527_s9  ;;  %v3084_v46 = vcombine.low %v692_v27, %v702_v26  ;;  %v726_v27 = vsel %vm2680_vm5, %v721_v22, %v725_v17  ;;  %v733_v26 = vrot.slane %v731_v24, 5  ;;  %v743_v42 = vrot.slane %v741_v25, 4  ;;  %v3192_v22 = vld [vmem:[%s2623_s7 + $0xa8] sm:$0xf] }
  0xb5   : > { %v1419_v37 = vpop.permute.xlu0 %1418  ;;  %v3146_v47 = vcombine.low %v716_v31, %v726_v27  ;;  %v937_v21 = vsel %vm2645_vm4, %v2209_v8, %v936_v19  ;;  %v940_v4 = vsel %vm2645_vm4, %v938_v33, %v939_v35  ;;  %v943_v17 = vrot.slane %v3111_v0, 5 }
  0xb6   : > { %v3071_v39 = vpop.permute.xlu1 %1132  ;;  %v1699_v40 = vsel %vm1695_vm14, %v1666_v36, %v1419_v37  ;;  %v3166_v60 = vcombine.low %v937_v21, %v940_v4  ;;  %v752_v33 = vshrl.u32 %v3192_v22, 16  ;;  %v755_v35 = vshll.u32 %v3192_v22, 16 }
  0xb7   : > { %1362 = vrot.lane.b32.xlu0 %v3006_v18, %s2531_s13  ;;  %2322 = vmatmul.mubr.msk.bf16.vlgmr.msra.gmra.mxu0 %vm1748_vm15, %v1699_v40  ;;  %v739_v40 = vrot.slane %v737_v29, 5  ;;  %v1460_v48 = vsel %vm1448_vm7, %v2725_v43, %v3071_v39  ;;  %v3198_v29 = vld [vmem:[%s2623_s7 + $0xac] sm:$0xf]  ;;  %v945_v31 = vrot.slane %v943_v17, 4 }
  0xb8   : > { %1364 = vrot.lane.b32.xlu1 %v3060_v34, %s2531_s13  ;;  %v761_v27 = vshll.u32 %v3198_v29, 16 }
  0xb9   : > { %v1211_v53 = vpop.permute.xlu0 %1210  ;;  %v744_v11 = vor.u32 %v743_v42, %v739_v40  ;;  %v757_v42 = vrot.slane %v755_v35, 5 }
  0xba   : > { %v3090_v54 = vpop.permute.xlu1 %1212  ;;  %v1503_v45 = vsel %vm1497_vm8, %v1457_v38, %v1211_v53  ;;  %v402_v38 = vld [vmem:[%s2623_s7 + $0xb0] sm:$0x1] }
  0xbb   : > { %1397 = vrot.lane.b32.xlu0 %v3027_v5, %s2532_s14  ;;  %v771_v4 = vshll.u32 %v402_v38, 16 }
  0xbc   : > { %1399 = vrot.lane.b32.xlu1 %v3084_v46, %s2532_s14 }
  0xbd   : > { %v1246_v59 = vpop.permute.xlu0 %1245 }
  0xbe   : > { %v1248_v2 = vpop.permute.xlu1 %1247  ;;  %v1536_v51 = vsel %vm1530_vm9, %v1503_v45, %v1246_v59  ;;  %v1505_v59 = vsel %vm1497_vm8, %v1460_v48, %v3090_v54  ;;  %v763_v45 = vrot.slane %v761_v27, 5  ;;  %v3236_v48 = vld [vmem:[%s2623_s7 + $0xb8] sm:$0xf] }
  0xbf   : > { %1432 = vrot.lane.b32.xlu0 %v3044_v55, %s2533_s21  ;;  %v1538_v9 = vsel %vm1530_vm9, %v1505_v59, %v1248_v2  ;;  %v773_v59 = vrot.slane %v771_v4, 5 }
  0xc0   : > { %1146 = vrot.lane.b32.xlu1 %v3027_v5, %s2529_s11  ;;  %v728_v5 = vshrl.u32 %v3108_v15, 16 }
  0xc1   : > { %v1281_v14 = vpop.permute.xlu0 %1280 }
  0xc2   : > { %v1283_v16 = vpop.permute.xlu1 %1282  ;;  %v730_v36 = vrot.slane %v728_v5, 4  ;;  %v1569_v53 = vsel %vm1563_vm10, %v1536_v51, %v1281_v14  ;;  %v745_v14 = vrot.slane %v744_v11, 4 }
  0xc3   : > { %1434 = vrot.lane.b32.xlu0 %v3103_v7, %s2533_s21 }
  0xc4   : > { %1148 = vrot.lane.b32.xlu1 %v3084_v46, %s2529_s11  ;;  %v734_v30 = vor.u32 %v733_v26, %v730_v36 }
  0xc5   : > { %v1316_v20 = vpop.permute.xlu0 %1315 }
  0xc6   : > { %v1318_v62 = vpop.permute.xlu1 %1317  ;;  %v1602_v58 = vsel %vm1596_vm11, %v1569_v53, %v1316_v20  ;;  %v735_v12 = vrot.slane %v734_v30, 4  ;;  %v3233_v53 = vld [vmem:[%s2623_s7 + $0xb4] sm:$0xf] }
  0xc7   : > { %1226 = vrot.lane.b32.xlu0 %v3044_v55, %s2528_s10  ;;  %v3136_v55 = vld [vmem:[%s2623_s7 + $0xa4] sm:$0x1] }
  0xc8   : > { %1228 = vrot.lane.b32.xlu1 %v3103_v7, %s2528_s10  ;;  %v747_v44 = vshll.u32 %v3136_v55, 16  ;;  %v740_v20 = vsel %vm2680_vm5, %v735_v12, %v739_v40  ;;  %v754_v40 = vrot.slane %v752_v33, 4  ;;  %v785_v12 = vshll.u32 %v3236_v48, 16 }
  0xc9   : > { %v1351_v37 = vpop.permute.xlu0 %1350 }
  0xca   : > { %v1353_v32 = vpop.permute.xlu1 %1352  ;;  %v1635_v61 = vsel %vm1629_vm12, %v1602_v58, %v1351_v37  ;;  %v749_v63 = vrot.slane %v747_v44, 5  ;;  %v765_v37 = vshrl.u32 %v3198_v29, 16 }
  0xcb   : > { %1261 = vrot.lane.b32.xlu0 %v3060_v34, %s2526_s8 }
  0xcc   : > { %1263 = vrot.lane.b32.xlu1 %v3126_v1, %s2526_s8  ;;  %v767_v21 = vrot.slane %v765_v37, 4 }
  0xcd   : > { %v1386_v10 = vpop.permute.xlu0 %1385 }
  0xce   : > { %v1388_v57 = vpop.permute.xlu1 %1387  ;;  %v1668_v43 = vsel %vm1662_vm13, %v1635_v61, %v1386_v10  ;;  %v758_v10 = vor.u32 %v757_v42, %v754_v40  ;;  %v768_v11 = vor.u32 %v767_v21, %v763_v45  ;;  %v950_v61 = vrot.slane %v3198_v29, 5 }
  0xcf   : > { %1296 = vrot.lane.b32.xlu0 %v3084_v46, %s2530_s12  ;;  %v1571_v46 = vsel %vm1563_vm10, %v1538_v9, %v1283_v16  ;;  %v3183_v16 = vcombine.low %v3108_v15, %v3111_v0  ;;  %v2210_v0 = vrot.slane %v3108_v15, 9 }
  0xd0   : > { %1298 = vrot.lane.b32.xlu1 %v3146_v47, %s2530_s12  ;;  %v1604_v6 = vsel %vm1596_vm11, %v1571_v46, %v1318_v62  ;;  %v946_v62 = vrot.slane %v3136_v55, 5  ;;  %v759_v58 = vrot.slane %v758_v10, 4  ;;  %v769_v9 = vrot.slane %v768_v11, 4 }
  0xd1   : > { %v1421_v39 = vpop.permute.xlu0 %1420  ;;  %v1637_v2 = vsel %vm1629_vm12, %v1604_v6, %v1353_v32  ;;  %v944_v15 = vsel %vm2645_vm4, %v2210_v0, %v943_v17  ;;  %v3251_v46 = vcombine.low %v3192_v22, %v3198_v29  ;;  %v953_v17 = vrot.slane %v402_v38, 5 }
  0xd2   : > { %v3171_v50 = vpop.permute.xlu1 %1134  ;;  %v1701_v54 = vsel %vm1695_vm14, %v1668_v43, %v1421_v39  ;;  %v1670_v19 = vsel %vm1662_vm13, %v1637_v2, %v1388_v57  ;;  %v947_v55 = vsel %vm2645_vm4, %v945_v31, %v946_v62  ;;  %v779_v43 = vshll.u32 %v3233_v53, 16 }
  0xd3   : > { %1331 = vrot.lane.b32.xlu0 %v3103_v7, %s2527_s9  ;;  %2325 = vmatprep.mubr.msk.bf16.mxu0 %vm1748_vm15, %v1701_v54  ;;  %v750_v7 = vsel %vm2680_vm5, %v745_v14, %v749_v63  ;;  %v3228_v51 = vcombine.low %v944_v15, %v947_v55  ;;  %v789_v39 = vshrl.u32 %v3236_v48, 16  ;;  %v2211_v54 = vrot.slane %v3192_v22, 9 }
  0xd4   : > { %1333 = vrot.lane.b32.xlu1 %v3166_v60, %s2527_s9  ;;  %v3207_v8 = vcombine.low %v740_v20, %v750_v7  ;;  %v764_v6 = vsel %vm2680_vm5, %v759_v58, %v763_v45  ;;  %v952_v2 = vrot.slane %v950_v61, 4  ;;  %v774_v20 = vsel %vm2680_vm5, %v769_v9, %v773_v59 }
  0xd5   : > { %v1423_v5 = vpop.permute.xlu0 %1422  ;;  %v781_v7 = vrot.slane %v779_v43, 5  ;;  %v791_v29 = vrot.slane %v789_v39, 4  ;;  %v1463_v0 = vsel %vm1448_vm7, %v2762_v23, %v3171_v50  ;;  %v3271_v31 = vcombine.low %v764_v6, %v774_v20 }
  0xd6   : > { %v3194_v24 = vpop.permute.xlu1 %1136  ;;  %v1703_v25 = vsel %vm1695_vm14, %v1670_v19, %v1423_v5  ;;  %v951_v33 = vsel %vm2645_vm4, %v2211_v54, %v950_v61  ;;  %v954_v23 = vsel %vm2645_vm4, %v952_v2, %v953_v17  ;;  %v957_v61 = vrot.slane %v3236_v48, 5 }
  0xd7   : > { %1366 = vrot.lane.b32.xlu0 %v3126_v1, %s2531_s13  ;;  %2326 = vmatmul.mubr.msk.bf16.gmra.mxu0 %vm1748_vm15, %v1703_v25  ;;  %v787_v25 = vrot.slane %v785_v12, 5  ;;  %v1466_v40 = vsel %vm1448_vm7, %v2787_v41, %v3194_v24  ;;  %v3292_v45 = vcombine.low %v951_v33, %v954_v23  ;;  %v2212_v17 = vrot.slane %v3233_v53, 9 }
  0xd8   : > { %1368 = vrot.lane.b32.xlu1 %v3183_v16, %s2531_s13 }
  0xd9   : > { %v1215_v36 = vpop.permute.xlu0 %1214  ;;  %v792_v15 = vor.u32 %v791_v29, %v787_v25 }
  0xda   : > { %v3213_v26 = vpop.permute.xlu1 %1216  ;;  %v1507_v62 = vsel %vm1497_vm8, %v1463_v0, %v1215_v36 }
  0xdb   : > { %1401 = vrot.lane.b32.xlu0 %v3146_v47, %s2532_s14  ;;  %v793_v10 = vrot.slane %v792_v15, 4 }
  0xdc   : > { %1403 = vrot.lane.b32.xlu1 %v3207_v8, %s2532_s14 }
  0xdd   : > { %v1250_v32 = vpop.permute.xlu0 %1249 }
  0xde   : > { %v3224_v44 = vpop.permute.xlu1 %1251  ;;  %v1540_v37 = vsel %vm1530_vm9, %v1507_v62, %v1250_v32  ;;  %v1509_v32 = vsel %vm1497_vm8, %v1466_v40, %v3213_v26 }
  0xdf   : > { %1436 = vrot.lane.b32.xlu0 %v3166_v60, %s2533_s21  ;;  %v1542_v41 = vsel %vm1530_vm9, %v1509_v32, %v3224_v44 }
  0xe0   : > { %1150 = vrot.lane.b32.xlu1 %v3146_v47, %s2529_s11  ;;  %v776_v47 = vshrl.u32 %v3233_v53, 16 }
  0xe1   : > { %v1285_v30 = vpop.permute.xlu0 %1284 }
  0xe2   : > { %v1287_v57 = vpop.permute.xlu1 %1286  ;;  %v778_v19 = vrot.slane %v776_v47, 4  ;;  %v1573_v36 = vsel %vm1563_vm10, %v1540_v37, %v1285_v30 }
  0xe3   : > { %1438 = vrot.lane.b32.xlu0 %v3228_v51, %s2533_s21  ;;  %v1575_v4 = vsel %vm1563_vm10, %v1542_v41, %v1287_v57  ;;  %v3318_v57 = vcombine.low %v3233_v53, %v3236_v48  ;;  %v958_v53 = vsel %vm2645_vm4, %v2212_v17, %v957_v61 }
  0xe4   : > { %1152 = vrot.lane.b32.xlu1 %v3207_v8, %s2529_s11  ;;  %v782_v50 = vor.u32 %v781_v7, %v778_v19  ;;  %v959_v19 = vrot.slane %v957_v61, 4 }
  0xe5   : > { %v1320_v63 = vpop.permute.xlu0 %1319 }
  0xe6   : > { %v1322_v14 = vpop.permute.xlu1 %1321  ;;  %v1606_v42 = vsel %vm1596_vm11, %v1573_v36, %v1320_v63  ;;  %v783_v26 = vrot.slane %v782_v50, 4 }
  0xe7   : > { %1230 = vrot.lane.b32.xlu0 %v3166_v60, %s2528_s10  ;;  %v3261_v60 = vld [vmem:[%s2623_s7 + $0xbc] sm:$0x1]  ;;  %s2293_s7 = sadd.s32 192, %s2617_s30  ;;  %v1608_v58 = vsel %vm1596_vm11, %v1575_v4, %v1322_v14  ;;  %s3360_s30 = scalar_lea.vmem %s3573_s2, %s2295_s29 }
  0xe8   : > { %1232 = vrot.lane.b32.xlu1 %v3228_v51, %s2528_s10  ;;  %v795_v35 = vshll.u32 %v3261_v60, 16  ;;  %s3297_s26 = scalar_lea.vmem %s3572_s1, %s2293_s7  ;;  %v788_v9 = vsel %vm2680_vm5, %v783_v26, %v787_v25  ;;  %v3371_v15 = vld [vmem:[%s3360_s30] sm:$0xf] }
  0xe9   : > { %v1355_v5 = vpop.permute.xlu0 %1354  ;;  %v3311_v44 = vld [vmem:[%s3297_s26] sm:$0xf]  ;;  %v3322_v47 = vld [vmem:[%s3297_s26 + $0x4] sm:$0xf]  ;;  %v408_v62 = vld [vmem:[%s3297_s26 + $0x8] sm:$0x1] }
  0xea   : > { %v1357_v22 = vpop.permute.xlu1 %1356  ;;  %v1639_v38 = vsel %vm1629_vm12, %v1606_v42, %v1355_v5  ;;  %v797_v21 = vrot.slane %v795_v35, 5  ;;  %v963_v14 = vshrl.u32 %v3311_v44, 16  ;;  %v966_v48 = vshll.u32 %v3311_v44, 16 }
  0xeb   : > { %1265 = vrot.lane.b32.xlu0 %v3183_v16, %s2526_s8  ;;  %v1641_v59 = vsel %vm1629_vm12, %v1608_v58, %v1357_v22  ;;  %v976_v54 = vshrl.u32 %v3322_v47, 16  ;;  %v972_v6 = vshll.u32 %v3322_v47, 16  ;;  %v960_v5 = vrot.slane %v3261_v60, 5 }
  0xec   : > { %1267 = vrot.lane.b32.xlu1 %v3251_v46, %s2526_s8  ;;  %v798_v43 = vsel %vm2680_vm5, %v793_v10, %v797_v21  ;;  %v965_v25 = vrot.slane %v963_v14, 4  ;;  %v968_v29 = vrot.slane %v966_v48, 5  ;;  %v982_v50 = vshll.u32 %v408_v62, 16  ;;  %v411_v14 = vld [vmem:[%s3360_s30 + $0x8] sm:$0x1] }
  0xed   : > { %v1390_v27 = vpop.permute.xlu0 %1389  ;;  %v3341_v2 = vcombine.low %v788_v9, %v798_v43  ;;  %v974_v22 = vrot.slane %v972_v6, 5  ;;  %v978_v0 = vrot.slane %v976_v54, 4  ;;  %v961_v60 = vsel %vm2645_vm4, %v959_v19, %v960_v5 }
  0xee   : > { %v1392_v55 = vpop.permute.xlu1 %1391  ;;  %v1672_v24 = vsel %vm1662_vm13, %v1639_v38, %v1390_v27  ;;  %v969_v37 = vor.u32 %v968_v29, %v965_v25  ;;  %v3366_v27 = vcombine.low %v958_v53, %v961_v60  ;;  %v984_v38 = vrot.slane %v982_v50, 5 }
  0xef   : > { %1300 = vrot.lane.b32.xlu0 %v3207_v8, %s2530_s12  ;;  %v1674_v63 = vsel %vm1662_vm13, %v1641_v59, %v1392_v55  ;;  %v979_v23 = vor.u32 %v978_v0, %v974_v22  ;;  %v3374_v55 = vld [vmem:[%s3360_s30 + $0x4] sm:$0xf]  ;;  %v997_v21 = vshrl.u32 %v3371_v15, 16  ;;  %v1000_v41 = vshll.u32 %v3371_v15, 16 }
  0xf0   : > { %1302 = vrot.lane.b32.xlu1 %v3271_v31, %s2530_s12  ;;  %v970_v42 = vrot.slane %v969_v37, 4  ;;  %v2263_v4 = vcombine.low %v3311_v44, %v3322_v47  ;;  %v2213_v59 = vrot.slane %v3311_v44, 9  ;;  %v994_v9 = vrot.slane %v408_v62, 5 }
  0xf1   : > { %v1425_v8 = vpop.permute.xlu0 %1424  ;;  %v980_v32 = vrot.slane %v979_v23, 4  ;;  %v999_v61 = vrot.slane %v997_v21, 4  ;;  %v1016_v25 = vshll.u32 %v411_v14, 16 }
  0xf2   : > { %v3303_v30 = vpop.permute.xlu1 %1138  ;;  %v1705_v11 = vsel %vm1695_vm14, %v1672_v24, %v1425_v8  ;;  %v1010_v24 = vshrl.u32 %v3374_v55, 16  ;;  %v1006_v8 = vshll.u32 %v3374_v55, 16 }
  0xf3   : > { %1335 = vrot.lane.b32.xlu0 %v3228_v51, %s2527_s9  ;;  %2329 = vmatprep.mubr.msk.bf16.mxu0 %vm1748_vm15, %v1705_v11  ;;  %v975_v11 = vsel %vm2680_vm5, %v970_v42, %v974_v22  ;;  %v985_v58 = vsel %vm2680_vm5, %v980_v32, %v984_v38  ;;  %v1018_v23 = vrot.slane %v1016_v25, 5 }
  0xf4   : > { %1337 = vrot.lane.b32.xlu1 %v3292_v45, %s2527_s9  ;;  %v1008_v43 = vrot.slane %v1006_v8, 5  ;;  %v2264_v44 = vcombine.low %v975_v11, %v985_v58  ;;  %v1028_v8 = vrot.slane %v411_v14, 5 }
  0xf5   : > { %v1427_v51 = vpop.permute.xlu0 %1426 }
  0xf6   : > { %v3329_v39 = vpop.permute.xlu1 %1140  ;;  %v1707_v12 = vsel %vm1695_vm14, %v1674_v63, %v1427_v51  ;;  %v1002_v63 = vrot.slane %v1000_v41, 5 }
  0xf7   : > { %1370 = vrot.lane.b32.xlu0 %v3251_v46, %s2531_s13  ;;  %2330 = vmatmul.mubr.msk.bf16.gmra.mxu0 %vm1748_vm15, %v1707_v12  ;;  %v1472_v0 = vsel %vm1448_vm7, %v2875_v49, %v3329_v39 }
  0xf8   : > { %1372 = vrot.lane.b32.xlu1 %v3318_v57, %s2531_s13  ;;  %v1003_v6 = vor.u32 %v1002_v63, %v999_v61 }
  0xf9   : > { %v1219_v20 = vpop.permute.xlu0 %1218 }
  0xfa   : > { %v3345_v7 = vpop.permute.xlu1 %1220  ;;  %v1004_v60 = vrot.slane %v1003_v6, 4 }
  0xfb   : > { %1405 = vrot.lane.b32.xlu0 %v3271_v31, %s2532_s14  ;;  %v1513_v62 = vsel %vm1497_vm8, %v1472_v0, %v3345_v7 }
  0xfc   : > { %1407 = vrot.lane.b32.xlu1 %v3341_v2, %s2532_s14 }
  0xfd   : > { %v1254_v33 = vpop.permute.xlu0 %1253 }
  0xfe   : > { %v3362_v35 = vpop.permute.xlu1 %1255 }
  0xff   : > { %1440 = vrot.lane.b32.xlu0 %v3292_v45, %s2533_s21  ;;  %v1546_v50 = vsel %vm1530_vm9, %v1513_v62, %v3362_v35  ;;  %v2266_v35 = vcombine.low %v3371_v15, %v3374_v55 }
 0x100   : > { %1154 = vrot.lane.b32.xlu1 %v3271_v31, %s2529_s11  ;;  %v991_v31 = vrot.slane %v3322_v47, 5  ;;  %v1012_v47 = vrot.slane %v1010_v24, 4 }
 0x101   : > { %v1289_v36 = vpop.permute.xlu0 %1288 }
 0x102   : > { %v1291_v40 = vpop.permute.xlu1 %1290  ;;  %v993_v51 = vrot.slane %v991_v31, 4  ;;  %v992_v54 = vsel %vm2645_vm4, %v2213_v59, %v991_v31  ;;  %v1013_v5 = vor.u32 %v1012_v47, %v1008_v43 }
 0x103   : > { %1442 = vrot.lane.b32.xlu0 %v3366_v27, %s2533_s21 }
 0x104   : > { %1156 = vrot.lane.b32.xlu1 %v3341_v2, %s2529_s11  ;;  %v995_v19 = vsel %vm2645_vm4, %v993_v51, %v994_v9  ;;  %v1014_v37 = vrot.slane %v1013_v5, 4 }
 0x105   : > { %v1324_v26 = vpop.permute.xlu0 %1323 }
 0x106   : > { %v1326_v10 = vpop.permute.xlu1 %1325  ;;  %v1019_v21 = vsel %vm2680_vm5, %v1014_v37, %v1018_v23 }
 0x107   : > { %1234 = vrot.lane.b32.xlu0 %v3292_v45, %s2528_s10  ;;  %v1469_v45 = vsel %vm1448_vm7, %v2851_v28, %v3303_v30 }
 0x108   : > { %1236 = vrot.lane.b32.xlu1 %v3366_v27, %s2528_s10  ;;  %v1511_v17 = vsel %vm1497_vm8, %v1469_v45, %v1219_v20  ;;  %v2265_v20 = vcombine.low %v992_v54, %v995_v19  ;;  %s2289_s10 = sshll.u32 %s2516_s18, 5  ;;  %s2452_s18 = sshll.u32 %s2534_s24, 4  ;;  %s2453_s18 = int_to_ptr.vmem [resolvable:$false] %s2452_s18 }
 0x109   : > { %v1359_v12 = vpop.permute.xlu0 %1358  ;;  %v1544_v29 = vsel %vm1530_vm9, %v1511_v17, %v1254_v33  ;;  %s2454_s26 = scalar_lea.vmem %s2453_s18, 64 }
 0x10a   : > { %v1361_v48 = vpop.permute.xlu1 %1360  ;;  %v1577_v30 = vsel %vm1563_vm10, %v1544_v29, %v1289_v36  ;;  %v1025_v36 = vrot.slane %v3374_v55, 5 }
 0x10b   : > { %1269 = vrot.lane.b32.xlu0 %v3318_v57, %s2526_s8  ;;  %v1610_v53 = vsel %vm1596_vm11, %v1577_v30, %v1324_v26 }
 0x10c   : > { %1271 = vrot.lane.b32.xlu1 %v2263_v4, %s2526_s8  ;;  %v1643_v33 = vsel %vm1629_vm12, %v1610_v53, %v1359_v12  ;;  %v1027_v24 = vrot.slane %v1025_v36, 4  ;;  %s305_s8 = sand.u32 1, %s2508_s16  }
 0x10d   : > { %v1394_v28 = vpop.permute.xlu0 %1393  ;;  %s2055_s7 = scalar_lea.sflag [#allocation3], %s305_s8 }
 0x10e   : > { %v1396_v22 = vpop.permute.xlu1 %1395  ;;  %v1676_v49 = vsel %vm1662_vm13, %v1643_v33, %v1394_v28  ;;  %v1029_v58 = vsel %vm2645_vm4, %v1027_v24, %v1028_v8 }
 0x10f   : > { %1304 = vrot.lane.b32.xlu0 %v3341_v2, %s2530_s12  ;;  %v1579_v2 = vsel %vm1563_vm10, %v1546_v50, %v1291_v40  ;;  %v1009_v40 = vsel %vm2680_vm5, %v1004_v60, %v1008_v43 }
 0x110   : > { %1306 = vrot.lane.b32.xlu1 %v2264_v44, %s2530_s12  ;;  %v1612_v7 = vsel %vm1596_vm11, %v1579_v2, %v1326_v10  ;;  %v2267_v55 = vcombine.low %v1009_v40, %v1019_v21 }
 0x111   : > { %v1429_v39 = vpop.permute.xlu0 %1428  ;;  %v1645_v38 = vsel %vm1629_vm12, %v1612_v7, %v1361_v48 }
 0x112   : > { %v1143_v42 = vpop.permute.xlu1 %1142  ;;  %v1709_v32 = vsel %vm1695_vm14, %v1676_v49, %v1429_v39  ;;  %v1678_v41 = vsel %vm1662_vm13, %v1645_v38, %v1396_v22 }
 0x113   : > { %1339 = vrot.lane.b32.xlu0 %v3366_v27, %s2527_s9  ;;  %2333 = vmatprep.mubr.msk.bf16.mxu0 %vm1748_vm15, %v1709_v32  ;;  %v2214_v27 = vrot.slane %v3371_v15, 9  ;;  %v1475_v13 = vsel %vm1448_vm7, %v2911_v3, %v1143_v42 }
 0x114   : > { %1341 = vrot.lane.b32.xlu1 %v2265_v20, %s2527_s9  ;;  %s2193_s9 = sshll.u32 %s305_s8, 1 }
 0x115   : > { %v1431_v31 = vpop.permute.xlu0 %1430  ;;  %v1026_v52 = vsel %vm2645_vm4, %v2214_v27, %v1025_v36  ;;  %s307_s11 = scalar_lea.vmem [#allocation2], %s2193_s9 }
 0x116   : > { %v1145_v26 = vpop.permute.xlu1 %1144  ;;  %v1711_v10 = vsel %vm1695_vm14, %v1678_v41, %v1431_v31  ;;  %v2268_v59 = vcombine.low %v1026_v52, %v1029_v58  ;;  %s2069_s12 = sshll.u32 %s307_s11, 4  ;;  %s2070_s12 = int_to_ptr.vmem [resolvable:$true] %s2069_s12 }
 0x117   : > { %1374 = vrot.lane.b32.xlu0 %v2263_v4, %s2531_s13  ;;  %2334 = vmatmul.mubr.msk.bf16.gmra.mxu0 %vm1748_vm15, %v1711_v10  ;;  %v1478_v6 = vsel %vm1448_vm7, %v2940_v56, %v1145_v26  ;;  %s2448_s22 = scalar_lea.vmem %s2070_s12, 32  ;;  %p2455_p1 = scmp.lt.s32.totalorder %s2070_s12, %s2453_s18 }
 0x118   : > { %1376 = vrot.lane.b32.xlu1 %v2266_v35, %s2531_s13  ;;  %p2449_p12 = scmp.ne.s32.totalorder %s2070_s12, %s2448_s22  ;;  %p2456_p2 = scmp.lt.s32.totalorder %s2454_s26, %s2448_s22 }
 0x119   : > { %v1223_v11 = vpop.permute.xlu0 %1222 }
 0x11a   : > { %v1225_v15 = vpop.permute.xlu1 %1224  ;;  %v1515_v14 = vsel %vm1497_vm8, %v1475_v13, %v1223_v11  ;;  %p2450_p13 = pnand %p2449_p12, %p2600_p4  ;;  %p2457_p3 = por %p2456_p2, %p2455_p1 }
 0x11b   : > { %1409 = vrot.lane.b32.xlu0 %v2264_v44, %s2532_s14  ;;  %v1517_v19 = vsel %vm1497_vm8, %v1478_v6, %v1225_v15 }
 0x11c   : > { %1411 = vrot.lane.b32.xlu1 %v2267_v55, %s2532_s14  ;;  %p2451_p0 = pneg %p2450_p13 }
 0x11d   : > { %v1258_v61 = vpop.permute.xlu0 %1257 }
 0x11e   : > { %v1260_v4 = vpop.permute.xlu1 %1259  ;;  %v1548_v48 = vsel %vm1530_vm9, %v1515_v14, %v1258_v61  ;;  %p2458_p5 = pnand %p2457_p3, %p2451_p0 }
 0x11f   : > { %1444 = vrot.lane.b32.xlu0 %v2265_v20, %s2533_s21  ;;  %v1550_v25 = vsel %vm1530_vm9, %v1517_v19, %v1260_v4 }
 0x120   : > { %1446 = vrot.lane.b32.xlu1 %v2268_v59, %s2533_s21  ;;  %s2067_s21 = scalar_lea.hbm %s3575_s4, %s2289_s10 }
 0x121   : > { %v1293_v63 = vpop.permute.xlu0 %1292 }
 0x122   : > { %v1295_v51 = vpop.permute.xlu1 %1294  ;;  %v1581_v44 = vsel %vm1563_vm10, %v1548_v48, %v1293_v63 }
 0x123   : > { %v1583_v28 = vsel %vm1563_vm10, %v1550_v25, %v1295_v51 }
 0x125   : > { %v1328_v9 = vpop.permute.xlu0 %1327 }
 0x126   : > { %v1330_v43 = vpop.permute.xlu1 %1329  ;;  %v1614_v17 = vsel %vm1596_vm11, %v1581_v44, %v1328_v9 }
 0x127   : > { %v1616_v0 = vsel %vm1596_vm11, %v1583_v28, %v1330_v43 }
 0x129   : > { %v1363_v47 = vpop.permute.xlu0 %1362 }
 0x12a   : > { %v1365_v12 = vpop.permute.xlu1 %1364  ;;  %v1647_v5 = vsel %vm1629_vm12, %v1614_v17, %v1363_v47 }
 0x12b   : > { %v1649_v56 = vsel %vm1629_vm12, %v1616_v0, %v1365_v12 }
 0x12d   : > { %v1398_v45 = vpop.permute.xlu0 %1397 }
 0x12e   : > { %v1400_v54 = vpop.permute.xlu1 %1399  ;;  %v1680_v3 = vsel %vm1662_vm13, %v1647_v5, %v1398_v45 }
 0x12f   : > { %v1682_v53 = vsel %vm1662_vm13, %v1649_v56, %v1400_v54 }
 0x131   : > { %v1433_v29 = vpop.permute.xlu0 %1432 }
 0x132   : > { %v1147_v30 = vpop.permute.xlu1 %1146  ;;  %v1713_v22 = vsel %vm1695_vm14, %v1680_v3, %v1433_v29 }
 0x133   : > { %2337 = vmatprep.mubr.msk.bf16.mxu1 %vm1748_vm15, %v1713_v22  ;;  %v1481_v7 = vsel %vm1448_vm7, %v3006_v18, %v1147_v30 }
 0x135   : > { %v1435_v20 = vpop.permute.xlu0 %1434 }
 0x136   : > { %v1149_v60 = vpop.permute.xlu1 %1148  ;;  %v1715_v62 = vsel %vm1695_vm14, %v1682_v53, %v1435_v20 }
 0x137   : > { %2338 = vmatmul.mubr.msk.bf16.vlgmr.msra.gmra.mxu1 %vm1748_vm15, %v1715_v62  ;;  %v1484_v31 = vsel %vm1448_vm7, %v3060_v34, %v1149_v60 }
 0x139   : > { %v1227_v33 = vpop.permute.xlu0 %1226 }
 0x13a   : > { %v1229_v37 = vpop.permute.xlu1 %1228  ;;  %v1519_v38 = vsel %vm1497_vm8, %v1481_v7, %v1227_v33 }
 0x13b   : > { %v1521_v24 = vsel %vm1497_vm8, %v1484_v31, %v1229_v37 }
 0x13d   : > { %v1262_v23 = vpop.permute.xlu0 %1261 }
 0x13e   : > { %v1264_v50 = vpop.permute.xlu1 %1263  ;;  %v1552_v35 = vsel %vm1530_vm9, %v1519_v38, %v1262_v23 }
 0x13f   : > { %v1554_v26 = vsel %vm1530_vm9, %v1521_v24, %v1264_v50 }
 0x141   : > { %v1297_v49 = vpop.permute.xlu0 %1296 }
 0x142   : > { %v1299_v39 = vpop.permute.xlu1 %1298  ;;  %v1585_v21 = vsel %vm1563_vm10, %v1552_v35, %v1297_v49 }
 0x143   : > { %v1587_v55 = vsel %vm1563_vm10, %v1554_v26, %v1299_v39 }
 0x145   : > { %v1332_v36 = vpop.permute.xlu0 %1331 }
 0x146   : > { %v1334_v2 = vpop.permute.xlu1 %1333  ;;  %v1618_v27 = vsel %vm1596_vm11, %v1585_v21, %v1332_v36 }
 0x147   : > { %v1620_v58 = vsel %vm1596_vm11, %v1587_v55, %v1334_v2 }
 0x149   : > { %v1367_v42 = vpop.permute.xlu0 %1366 }
 0x14a   : > { %v1369_v32 = vpop.permute.xlu1 %1368  ;;  %v1651_v8 = vsel %vm1629_vm12, %v1618_v27, %v1367_v42 }
 0x14b   : > { %v1653_v34 = vsel %vm1629_vm12, %v1620_v58, %v1369_v32 }
 0x14d   : > { %v1402_v40 = vpop.permute.xlu0 %1401 }
 0x14e   : > { %v1404_v41 = vpop.permute.xlu1 %1403  ;;  %v1684_v18 = vsel %vm1662_vm13, %v1651_v8, %v1402_v40 }
 0x14f   : > { %v1686_v15 = vsel %vm1662_vm13, %v1653_v34, %v1404_v41 }
 0x151   : > { %v1437_v10 = vpop.permute.xlu0 %1436 }
 0x152   : > { %v1151_v11 = vpop.permute.xlu1 %1150  ;;  %v1717_v52 = vsel %vm1695_vm14, %v1684_v18, %v1437_v10 }
 0x153   : > { %2341 = vmatprep.mubr.msk.bf16.mxu1 %vm1748_vm15, %v1717_v52  ;;  %v1487_v44 = vsel %vm1448_vm7, %v3126_v1, %v1151_v11 }
 0x155   : > { %v1439_v59 = vpop.permute.xlu0 %1438 }
 0x156   : > { %v1153_v61 = vpop.permute.xlu1 %1152  ;;  %v1719_v4 = vsel %vm1695_vm14, %v1686_v15, %v1439_v59 }
 0x157   : > { %2342 = vmatmul.mubr.msk.bf16.gmra.mxu1 %vm1748_vm15, %v1719_v4  ;;  %v1490_v25 = vsel %vm1448_vm7, %v3183_v16, %v1153_v61 }
 0x159   : > { %v1231_v63 = vpop.permute.xlu0 %1230 }
 0x15a   : > { %v1233_v51 = vpop.permute.xlu1 %1232  ;;  %v1523_v54 = vsel %vm1497_vm8, %v1487_v44, %v1231_v63 }
 0x15b   : > { %v1525_v29 = vsel %vm1497_vm8, %v1490_v25, %v1233_v51 }
 0x15d   : > { %v1266_v9 = vpop.permute.xlu0 %1265 }
 0x15e   : > { %v1268_v43 = vpop.permute.xlu1 %1267  ;;  %v1556_v6 = vsel %vm1530_vm9, %v1523_v54, %v1266_v9 }
 0x15f   : > { %v1558_v30 = vsel %vm1530_vm9, %v1525_v29, %v1268_v43 }
 0x161   : > { %v1301_v47 = vpop.permute.xlu0 %1300 }
 0x162   : > { %v1303_v12 = vpop.permute.xlu1 %1302  ;;  %v1589_v19 = vsel %vm1563_vm10, %v1556_v6, %v1301_v47 }
 0x163   : > { %v1591_v0 = vsel %vm1563_vm10, %v1558_v30, %v1303_v12 }
 0x165   : > { %v1336_v13 = vpop.permute.xlu0 %1335 }
 0x166   : > { %v1338_v14 = vpop.permute.xlu1 %1337  ;;  %v1622_v3 = vsel %vm1596_vm11, %v1589_v19, %v1336_v13 }
 0x167   : > { %v1624_v20 = vsel %vm1596_vm11, %v1591_v0, %v1338_v14 }
 0x169   : > { %v1371_v48 = vpop.permute.xlu0 %1370 }
 0x16a   : > { %v1373_v45 = vpop.permute.xlu1 %1372  ;;  %v1655_v28 = vsel %vm1629_vm12, %v1622_v3, %v1371_v48 }
 0x16b   : > { %v1657_v16 = vsel %vm1629_vm12, %v1624_v20, %v1373_v45 }
 0x16d   : > { %v1406_v17 = vpop.permute.xlu0 %1405 }
 0x16e   : > { %v1408_v5 = vpop.permute.xlu1 %1407  ;;  %v1688_v1 = vsel %vm1662_vm13, %v1655_v28, %v1406_v17 }
 0x16f   : > { %v1690_v60 = vsel %vm1662_vm13, %v1657_v16, %v1408_v5 }
 0x171   : > { %v1441_v22 = vpop.permute.xlu0 %1440 }
 0x172   : > { %v1155_v56 = vpop.permute.xlu1 %1154  ;;  %v1721_v53 = vsel %vm1695_vm14, %v1688_v1, %v1441_v22 }
 0x173   : > { %2345 = vmatprep.mubr.msk.bf16.mxu1 %vm1748_vm15, %v1721_v53  ;;  %v1493_v35 = vsel %vm1448_vm7, %v3251_v46, %v1155_v56 }
 0x175   : > { %v1443_v62 = vpop.permute.xlu0 %1442 }
 0x176   : > { %v1157_v33 = vpop.permute.xlu1 %1156  ;;  %v1723_v37 = vsel %vm1695_vm14, %v1690_v60, %v1443_v62 }
 0x177   : > { %2346 = vmatmul.mubr.msk.bf16.gmra.mxu1 %vm1748_vm15, %v1723_v37  ;;  %v1496_v40 = vsel %vm1448_vm7, %v3318_v57, %v1157_v33  ;;  %v2323_v61 = vpop.f32.mrf.mxu0 }
 0x178   : > { %v1986_v44 = vmul.f32 %v2323_v61, %v2323_v61 }
 0x179   : > { %v1235_v23 = vpop.permute.xlu0 %1234  ;;  %v1819_v4 = vpop.f32.mrf.mxu0 }
 0x17a   : > { %v1237_v50 = vpop.permute.xlu1 %1236  ;;  %v1527_v21 = vsel %vm1497_vm8, %v1493_v35, %v1235_v23  ;;  %v1984_v13 = vmul.f32 %v1819_v4, %v1819_v4 }
 0x17b   : > { %v1529_v41 = vsel %vm1497_vm8, %v1496_v40, %v1237_v50  ;;  %v2324_v63 = vpop.f32.mrf.mxu0 }
 0x17c   : > { %v1987_v19 = vmul.f32 %v2324_v63, %v2324_v63 }
 0x17d   : > { %v1270_v49 = vpop.permute.xlu0 %1269  ;;  %v1822_v51 = vpop.f32.mrf.mxu0 }
 0x17e   : > { %v1272_v39 = vpop.permute.xlu1 %1271  ;;  %v1560_v31 = vsel %vm1530_vm9, %v1527_v21, %v1270_v49  ;;  %v1985_v47 = vmul.f32 %v1822_v51, %v1822_v51  ;;  %v1946_v14 = vadd.f32 %v1822_v51, %v1819_v4 }
 0x17f   : > { %v1562_v24 = vsel %vm1530_vm9, %v1529_v41, %v1272_v39 }
 0x180   : > { %v2016_v48 = vadd.f32 %v1985_v47, %v1984_v13  ;;  %v1947_v54 = vadd.f32 %v2323_v61, %v1946_v14 }
 0x181   : > { %v1305_v36 = vpop.permute.xlu0 %1304 }
 0x182   : > { %v1307_v2 = vpop.permute.xlu1 %1306  ;;  %v1593_v8 = vsel %vm1563_vm10, %v1560_v31, %v1305_v36  ;;  %v2017_v17 = vadd.f32 %v2016_v48, %v1986_v44  ;;  %v1948_v5 = vadd.f32 %v2324_v63, %v1947_v54 }
 0x183   : > { %v1595_v18 = vsel %vm1563_vm10, %v1562_v24, %v1307_v2 }
 0x184   : > { %v2018_v28 = vadd.f32 %v2017_v17, %v1987_v19 }
 0x185   : > { %v1340_v42 = vpop.permute.xlu0 %1339 }
 0x186   : > { %v1342_v32 = vpop.permute.xlu1 %1341  ;;  %v1626_v10 = vsel %vm1596_vm11, %v1593_v8, %v1340_v42 }
 0x187   : > { %v1628_v46 = vsel %vm1596_vm11, %v1595_v18, %v1342_v32 }
 0x189   : > { %v1375_v7 = vpop.permute.xlu0 %1374 }
 0x18a   : > { %v1377_v38 = vpop.permute.xlu1 %1376  ;;  %v1659_v57 = vsel %vm1629_vm12, %v1626_v10, %v1375_v7 }
 0x18b   : > { %v1661_v55 = vsel %vm1629_vm12, %v1628_v46, %v1377_v38 }
 0x18d   : > { %v1410_v27 = vpop.permute.xlu0 %1409 }
 0x18e   : > { %v1412_v26 = vpop.permute.xlu1 %1411  ;;  %v1692_v11 = vsel %vm1662_vm13, %v1659_v57, %v1410_v27 }
 0x18f   : > { %v1694_v58 = vsel %vm1662_vm13, %v1661_v55, %v1412_v26 }
 0x191   : > { %v1445_v52 = vpop.permute.xlu0 %1444 }
 0x192   : > { %v1447_v34 = vpop.permute.xlu1 %1446  ;;  %v1725_v15 = vsel %vm1695_vm14, %v1692_v11, %v1445_v52 }
 0x193   : > { %v1727_v59 = vsel %vm1695_vm14, %v1694_v58, %v1447_v34  ;;  %2349 = vmatprep.mubr.msk.bf16.mxu1 %vm1748_vm15, %v1725_v15 }
 0x194   : > { %2350 = vmatmul.mubr.msk.bf16.gmra.mxu1 %vm1748_vm15, %v1727_v59 }
 0x197   : > { %v2327_v9 = vpop.f32.mrf.mxu0 }
 0x198   : > { %v1990_v53 = vmul.f32 %v2327_v9, %v2327_v9 }
 0x199   : > { %v1835_v43 = vpop.f32.mrf.mxu0 }
 0x19a   : > { %v1988_v25 = vmul.f32 %v1835_v43, %v1835_v43  ;;  %v1949_v29 = vadd.f32 %v1948_v5, %v1835_v43 }
 0x19b   : > { %v2328_v12 = vpop.f32.mrf.mxu0 }
 0x19c   : > { %v2019_v1 = vadd.f32 %v2018_v28, %v1988_v25  ;;  %v1991_v33 = vmul.f32 %v2328_v12, %v2328_v12 }
 0x19d   : > { %v1838_v45 = vpop.f32.mrf.mxu0 }
 0x19e   : > { %v1989_v30 = vmul.f32 %v1838_v45, %v1838_v45  ;;  %v1950_v22 = vadd.f32 %v1949_v29, %v1838_v45 }
 0x1a0   : > { %v2020_v56 = vadd.f32 %v2019_v1, %v1989_v30  ;;  %v1951_v20 = vadd.f32 %v2327_v9, %v1950_v22 }
 0x1a2   : > { %v2021_v60 = vadd.f32 %v2020_v56, %v1990_v53  ;;  %v1952_v37 = vadd.f32 %v2328_v12, %v1951_v20 }
 0x1a4   : > { %v2022_v49 = vadd.f32 %v2021_v60, %v1991_v33 }
 0x1b7   : > { %v2331_v6 = vpop.f32.mrf.mxu0 }
 0x1b8   : > { %v1994_v35 = vmul.f32 %v2331_v6, %v2331_v6 }
 0x1b9   : > { %v1851_v3 = vpop.f32.mrf.mxu0 }
 0x1ba   : > { %v1992_v23 = vmul.f32 %v1851_v3, %v1851_v3  ;;  %v1953_v50 = vadd.f32 %v1952_v37, %v1851_v3 }
 0x1bb   : > { %v2332_v0 = vpop.f32.mrf.mxu0 }
 0x1bc   : > { %v2023_v2 = vadd.f32 %v2022_v49, %v1992_v23  ;;  %v1995_v27 = vmul.f32 %v2332_v0, %v2332_v0 }
 0x1bd   : > { %v1854_v16 = vpop.f32.mrf.mxu0 }
 0x1be   : > { %v1993_v39 = vmul.f32 %v1854_v16, %v1854_v16  ;;  %v1954_v42 = vadd.f32 %v1953_v50, %v1854_v16 }
 0x1c0   : > { %v2024_v32 = vadd.f32 %v2023_v2, %v1993_v39  ;;  %v1955_v40 = vadd.f32 %v2331_v6, %v1954_v42 }
 0x1c2   : > { %v2025_v21 = vadd.f32 %v2024_v32, %v1994_v35  ;;  %v1956_v24 = vadd.f32 %v2332_v0, %v1955_v40 }
 0x1c4   : > { %v2026_v18 = vadd.f32 %v2025_v21, %v1995_v27 }
 0x1d7   : > { %v2335_v62 = vpop.f32.mrf.mxu0 }
 0x1d8   : > { %v1998_v58 = vmul.f32 %v2335_v62, %v2335_v62 }
 0x1d9   : > { %v1867_v36 = vpop.f32.mrf.mxu0 }
 0x1da   : > { %v1996_v8 = vmul.f32 %v1867_v36, %v1867_v36  ;;  %v1957_v26 = vadd.f32 %v1956_v24, %v1867_v36 }
 0x1db   : > { %v2336_v7 = vpop.f32.mrf.mxu0 }
 0x1dc   : > { %v2027_v57 = vadd.f32 %v2026_v18, %v1996_v8  ;;  %v1999_v61 = vmul.f32 %v2336_v7, %v2336_v7 }
 0x1dd   : > { %v1870_v41 = vpop.f32.mrf.mxu0 }
 0x1de   : > { %v1997_v10 = vmul.f32 %v1870_v41, %v1870_v41  ;;  %v1958_v55 = vadd.f32 %v1957_v26, %v1870_v41 }
 0x1e0   : > { %v2028_v11 = vadd.f32 %v2027_v57, %v1997_v10  ;;  %v1959_v34 = vadd.f32 %v2335_v62, %v1958_v55 }
 0x1e2   : > { %v2029_v59 = vadd.f32 %v2028_v11, %v1998_v58  ;;  %v1960_v4 = vadd.f32 %v2336_v7, %v1959_v34 }
 0x1e4   : > { %v2030_v43 = vadd.f32 %v2029_v59, %v1999_v61 }
 0x1f7   : > { %v2339_v38 = vpop.f32.mrf.mxu1 }
 0x1f8   : > { %v2002_v45 = vmul.f32 %v2339_v38, %v2339_v38 }
 0x1f9   : > { %v1883_v31 = vpop.f32.mrf.mxu1 }
 0x1fa   : > { %v2000_v63 = vmul.f32 %v1883_v31, %v1883_v31  ;;  %v1961_v9 = vadd.f32 %v1960_v4, %v1883_v31 }
 0x1fb   : > { %v2340_v46 = vpop.f32.mrf.mxu1 }
 0x1fc   : > { %v2031_v12 = vadd.f32 %v2030_v43, %v2000_v63  ;;  %v2003_v19 = vmul.f32 %v2340_v46, %v2340_v46 }
 0x1fd   : > { %v1886_v52 = vpop.f32.mrf.mxu1 }
 0x1fe   : > { %v2001_v47 = vmul.f32 %v1886_v52, %v1886_v52  ;;  %v1962_v13 = vadd.f32 %v1961_v9, %v1886_v52 }
 0x200   : > { %v2032_v48 = vadd.f32 %v2031_v12, %v2001_v47  ;;  %v1963_v44 = vadd.f32 %v2339_v38, %v1962_v13 }
 0x202   : > { %v2033_v6 = vadd.f32 %v2032_v48, %v2002_v45  ;;  %v1964_v5 = vadd.f32 %v2340_v46, %v1963_v44 }
 0x204   : > { %v2034_v29 = vadd.f32 %v2033_v6, %v2003_v19 }
 0x217   : > { %v2343_v15 = vpop.f32.mrf.mxu1 }
 0x218   : > { %v2006_v53 = vmul.f32 %v2343_v15, %v2343_v15 }
 0x219   : > { %v1899_v51 = vpop.f32.mrf.mxu1 }
 0x21a   : > { %v2004_v25 = vmul.f32 %v1899_v51, %v1899_v51  ;;  %v1965_v3 = vadd.f32 %v1964_v5, %v1899_v51 }
 0x21b   : > { %v2344_v14 = vpop.f32.mrf.mxu1 }
 0x21c   : > { %v2035_v1 = vadd.f32 %v2034_v29, %v2004_v25  ;;  %v2007_v62 = vmul.f32 %v2344_v14, %v2344_v14 }
 0x21d   : > { %v1902_v54 = vpop.f32.mrf.mxu1 }
 0x21e   : > { %v2005_v28 = vmul.f32 %v1902_v54, %v1902_v54  ;;  %v1966_v22 = vadd.f32 %v1965_v3, %v1902_v54 }
 0x220   : > { %v2036_v0 = vadd.f32 %v2035_v1, %v2005_v28  ;;  %v1967_v20 = vadd.f32 %v2343_v15, %v1966_v22 }
 0x222   : > { %v2037_v16 = vadd.f32 %v2036_v0, %v2006_v53  ;;  %v1968_v33 = vadd.f32 %v2344_v14, %v1967_v20 }
 0x224   : > { %v2038_v50 = vadd.f32 %v2037_v16, %v2007_v62 }
 0x237   : > { %v2347_v17 = vpop.f32.mrf.mxu1 }
 0x238   : > { %v2010_v42 = vmul.f32 %v2347_v17, %v2347_v17 }
 0x239   : > { %v1915_v30 = vpop.f32.mrf.mxu1 }
 0x23a   : > { %v2008_v37 = vmul.f32 %v1915_v30, %v1915_v30  ;;  %v1969_v23 = vadd.f32 %v1968_v33, %v1915_v30 }
 0x23b   : > { %v2348_v56 = vpop.f32.mrf.mxu1 }
 0x23c   : > { %v2039_v39 = vadd.f32 %v2038_v50, %v2008_v37  ;;  %v2011_v40 = vmul.f32 %v2348_v56, %v2348_v56 }
 0x23d   : > { %v1918_v60 = vpop.f32.mrf.mxu1 }
 0x23e   : > { %v2009_v49 = vmul.f32 %v1918_v60, %v1918_v60  ;;  %v1970_v36 = vadd.f32 %v1969_v23, %v1918_v60 }
 0x240   : > { %v2040_v2 = vadd.f32 %v2039_v39, %v2009_v49  ;;  %v1971_v32 = vadd.f32 %v2347_v17, %v1970_v36 }
 0x242   : > { %v2041_v38 = vadd.f32 %v2040_v2, %v2010_v42  ;;  %v1972_v21 = vadd.f32 %v2348_v56, %v1971_v32 }
 0x244   : > { %v2042_v24 = vadd.f32 %v2041_v38, %v2011_v40 }
 0x254   : > { %v2351_v7 = vpop.f32.mrf.mxu1 }
 0x255   : > { %v2014_v46 = vmul.f32 %v2351_v7, %v2351_v7 }
 0x256   : > { %v1931_v35 = vpop.f32.mrf.mxu1 }
 0x257   : > { %v2012_v41 = vmul.f32 %v1931_v35, %v1931_v35  ;;  %v1973_v27 = vadd.f32 %v1972_v21, %v1931_v35 }
 0x258   : > { %v2352_v31 = vpop.f32.mrf.mxu1 }
 0x259   : > { %v2043_v26 = vadd.f32 %v2042_v24, %v2012_v41  ;;  %v2015_v11 = vmul.f32 %v2352_v31, %v2352_v31 }
 0x25a   : > { %v1934_v8 = vpop.f32.mrf.mxu1 }
 0x25b   : > { %v1974_v18 = vadd.f32 %v1973_v27, %v1934_v8  ;;  %v2013_v10 = vmul.f32 %v1934_v8, %v1934_v8 }
 0x25d   : > { %v1975_v57 = vadd.f32 %v2351_v7, %v1974_v18  ;;  %v2044_v55 = vadd.f32 %v2043_v26, %v2013_v10 }
 0x25f   : > { %v1976_v52 = vadd.f32 %v2352_v31, %v1975_v57  ;;  %v2045_v58 = vadd.f32 %v2044_v55, %v2014_v46 }
 0x261   : > { %v1977_v34 = vrot.slane %v1976_v52, 4  ;;  %v2046_v15 = vadd.f32 %v2045_v58, %v2015_v11 }
 0x263   : > { %v1978_v59 = vadd.f32 %v1977_v34, %v1976_v52  ;;  %v2047_v61 = vrot.slane %v2046_v15, 4 }
 0x265   : > { %v1979_v4 = vrot.slane %v1978_v59, 2  ;;  %v2048_v63 = vadd.f32 %v2047_v61, %v2046_v15 }
 0x267   : > { %v1980_v51 = vadd.f32 %v1979_v4, %v1978_v59  ;;  %v2049_v9 = vrot.slane %v2048_v63, 2 }
 0x269   : > { %v1981_v43 = vrot.slane %v1980_v51, 1  ;;  %v2050_v47 = vadd.f32 %v2049_v9, %v2048_v63 }
 0x26b   : > { %v1982_v12 = vadd.f32 %v1981_v43, %v1980_v51  ;;  %v2051_v13 = vrot.slane %v2050_v47, 1 }
 0x26d   : > { %1983 = vst [vmem:[%s307_s11] sm:$0x1] %v1982_v12  ;;  %v2052_v14 = vadd.f32 %v2051_v13, %v2050_v47 }
 0x26f   : > { %2053 = vst [vmem:[%s307_s11 + $0x1] sm:$0x1] %v2052_v14 }
 0x270   : > { %2461 = shalt.err (!%p2458_p5)
}
 0x271   : > { %s2462_s29 = scalar_lea.hbm %s2067_s21, 32  ;;  %s2466_s30 = scalar_lea.hbm %s3575_s4, 64 }
 0x272   : > { %p2463_p6 = scmp.ne.s32.totalorder %s2067_s21, %s2462_s29  ;;  %p2467_p10 = scmp.lt.s32.totalorder %s2067_s21, %s3575_s4 }
 0x273   : > { %p2468_p11 = scmp.lt.s32.totalorder %s2466_s30, %s2462_s29 }
 0x274   : > { %p2464_p7 = pnand %p2463_p6, %p2600_p4 }
 0x275   : > { %p2469_p12 = por %p2468_p11, %p2467_p10 }
 0x276   : > { %p2465_p9 = pneg %p2464_p7 }
 0x278   : > { %p2470_p13 = pnand %p2469_p12, %p2465_p9 }
 0x27a   : > { %2473 = shalt.err (!%p2470_p13)
}
 0x27b   : > { %2363 = dma.vmem_to_hbm [thread:$0]  (%p2600_p4), %s2070_s12, 32, %s2067_s21, %s2055_s7  }
 0x27c PF: > { %p2370_p0 = scmp.ge.s32.totalorder %s2524_s20, 2  ;;  %s2081_s10 = sand.u32 1, %s2504_s15  }
 0x27d   : > { %s2082_s11 = scalar_lea.sflag [#allocation3], %s2081_s10 }
 0x27e   : > { %p2366_p1 = pnand %p2370_p0, %p2607_p8 }
 0x280   : > { %p2367_p2 = pneg %p2366_p1 }
 0x282   : > { %2499 = dma.done.wait (%p2367_p2), %s2082_s11, 32  }
 0x283   : > { %2501 = vsyncadd (%p2367_p2), %s2082_s11, 4294967264  ;;  %s17_s20 = sadd.s32 1, %s2524_s20   ;;  %s3582_s15 = smov %s2508_s16 }
 0x284   : > { %p14_p3 = scmp.ge.s32.totalorder %s17_s20, 4   ;;  %s3583_s16 = smov %s2512_s17 }
 0x285   : > { %s3584_s17 = smov %s2613_s28  ;;  %s3585_s18 = smov %s2520_s19 }
 0x286   : > { %s3586_s19 = smov %s3588_s23  ;;  %16 = sbr.rel (!%p14_p3) target bundleno = 4 (0x4), region = 77 }
 0x28b   :  { %2087 = vsyncpa [#allocation3], 1 }
 0x28c   :  { %2089 = vsyncpa [#allocation3 + $0x1], 1 }

</bundles_post_ra>
